<compile_context>
chip_gen: v7x
topology: tpu7x:2x2x1
jax: 0.10.0
libtpu: 0.0.40
codegen_flags: <defaults>
</compile_context>

<pallas_src>
import functools

import jax
import jax.numpy as jnp
from jax.experimental import pallas as pl
from jax.experimental.pallas import tpu as pltpu


# ---------------------------------------------------------------------------
# Fused kernel: per-sample  W @ patches_T  (+ bias) (+ InstanceNorm) + LeakyReLU
#               (+ optional folded final 1-output conv "head")
# ---------------------------------------------------------------------------
def _fused_conv_kernel(*refs, use_bias, use_norm, fuse_head, slope, eps):
    it = iter(refs)
    x_ref = next(it)                         # (1, K, HW)  bf16 transposed patches
    w_ref = next(it)                         # (Cout, K)   bf16 weight
    b_ref = next(it) if use_bias else None   # (Cout, 1)   f32
    g_ref = next(it) if use_norm else None   # (Cout, 1)   f32
    be_ref = next(it) if use_norm else None  # (Cout, 1)   f32
    hw_ref = next(it) if fuse_head else None # (Cout, HW)  f32 final-conv weight
    hb_ref = next(it) if fuse_head else None # (1, 1)      f32 final-conv bias
    o_ref = next(it)

    # MXU: (Cout, K) @ (K, HW) -> f32 (Cout, HW); lanes = spatial (dense).
    acc = jnp.dot(w_ref[...], x_ref[0], preferred_element_type=jnp.float32)

    if use_bias:
        acc = acc + b_ref[...]
    if use_norm:
        # InstanceNorm2d: per-(sample, channel) stats over spatial, biased var,
        # matching torch semantics; all in f32 on the accumulator.
        mu = jnp.mean(acc, axis=-1, keepdims=True)
        var = jnp.mean(jnp.square(acc - mu), axis=-1, keepdims=True)
        acc = (acc - mu) * jax.lax.rsqrt(var + eps)
        acc = acc * g_ref[...] + be_ref[...]
    # LeakyReLU
    acc = jnp.where(acc >= 0, acc, slope * acc)

    if fuse_head:
        # Final Conv(fd*8, 1, 4, 2, 0) on a 4x4 map == one dot per sample.
        head = jnp.sum(acc * hw_ref[...], keepdims=True) + hb_ref[...]  # (1, 1)
        o_ref[0] = head.astype(o_ref.dtype)
    else:
        o_ref[0] = acc.astype(o_ref.dtype)


def fused_conv(patches_t, w2d_t, *, bias=None, gamma=None, beta=None,
               head_w=None, head_b=None, slope=0.2, eps=1e-5,
               out_dtype=jnp.bfloat16):
    """Per-sample fused conv (+bias)(+InstanceNorm)+LeakyReLU(+final head)."""
    N, K, HW = patches_t.shape
    Cout = w2d_t.shape[0]
    use_bias = bias is not None
    use_norm = gamma is not None
    fuse_head = head_w is not None

    operands = [patches_t.astype(jnp.bfloat16), w2d_t.astype(jnp.bfloat16)]
    in_specs = [
        pl.BlockSpec((1, K, HW), lambda n: (n, 0, 0)),
        pl.BlockSpec((Cout, K), lambda n: (0, 0)),
    ]
    if use_bias:
        operands.append(bias.reshape(Cout, 1).astype(jnp.float32))
        in_specs.append(pl.BlockSpec((Cout, 1), lambda n: (0, 0)))
    if use_norm:
        operands.append(gamma.reshape(Cout, 1).astype(jnp.float32))
        in_specs.append(pl.BlockSpec((Cout, 1), lambda n: (0, 0)))
        operands.append(beta.reshape(Cout, 1).astype(jnp.float32))
        in_specs.append(pl.BlockSpec((Cout, 1), lambda n: (0, 0)))
    if fuse_head:
        operands.append(head_w.astype(jnp.float32))              # (Cout, HW)
        in_specs.append(pl.BlockSpec((Cout, HW), lambda n: (0, 0)))
        operands.append(head_b.reshape(1, 1).astype(jnp.float32))
        in_specs.append(pl.BlockSpec((1, 1), lambda n: (0, 0)))
        out_shape = jax.ShapeDtypeStruct((N, 1, 1), jnp.float32)
        out_spec = pl.BlockSpec((1, 1, 1), lambda n: (n, 0, 0))
    else:
        out_shape = jax.ShapeDtypeStruct((N, Cout, HW), out_dtype)
        out_spec = pl.BlockSpec((1, Cout, HW), lambda n: (n, 0, 0))

    kernel = functools.partial(
        _fused_conv_kernel, use_bias=use_bias, use_norm=use_norm,
        fuse_head=fuse_head, slope=slope, eps=eps)

    return pl.pallas_call(
        kernel,
        out_shape=out_shape,
        grid=(N,),
        in_specs=in_specs,
        out_specs=out_spec,
        compiler_params=pltpu.CompilerParams(
            dimension_semantics=("parallel",)),
    )(*operands)


# ---------------------------------------------------------------------------
# Glue: transposed im2col (NCHW) + weight reshaping (plain JAX)
# ---------------------------------------------------------------------------
# TODO(synk): im2col patch extraction still materializes in HBM via XLA; an
# in-kernel strided-DMA im2col would remove that extra round trip.
def im2col_t(x_nchw, k, s, p):
    """Return transposed patches (N, k*k*Cin, Ho*Wo), K ordered as (kh, kw, cin)."""
    N, Cin, H, W = x_nchw.shape
    xp = jnp.pad(x_nchw, ((0, 0), (0, 0), (p, p), (p, p)))
    Ho = (H + 2 * p - k) // s + 1
    Wo = (W + 2 * p - k) // s + 1
    taps = []
    for i in range(k):
        for j in range(k):
            taps.append(xp[:, :, i:i + s * (Ho - 1) + 1:s,
                              j:j + s * (Wo - 1) + 1:s])       # (N, Cin, Ho, Wo)
    pt = jnp.stack(taps, axis=1)                               # (N, k*k, Cin, Ho, Wo)
    return pt.reshape(N, k * k * Cin, Ho * Wo), Ho, Wo


def weight_t(w_oihw):
    """torch (Cout, Cin, kh, kw) -> (Cout, kh*kw*Cin), matching im2col_t K order."""
    cout = w_oihw.shape[0]
    return jnp.transpose(w_oihw, (0, 2, 3, 1)).reshape(cout, -1)


# ---------------------------------------------------------------------------
# Discriminator parameters + forward
# ---------------------------------------------------------------------------
def init_params(key, channels_img, features_d):
    def conv_w(k, cout, cin, ksz):
        return jax.random.normal(k, (cout, cin, ksz, ksz), jnp.float32) * 0.05

    keys = jax.random.split(key, 8)
    fd = features_d
    return {
        "w1": conv_w(keys[0], fd, channels_img, 4),
        "b1": jax.random.normal(keys[1], (fd,), jnp.float32) * 0.05,
        "w2": conv_w(keys[2], fd * 2, fd, 4),
        "g2": jnp.ones((fd * 2,), jnp.float32),
        "be2": jnp.zeros((fd * 2,), jnp.float32),
        "w3": conv_w(keys[3], fd * 4, fd * 2, 4),
        "g3": jnp.ones((fd * 4,), jnp.float32),
        "be3": jnp.zeros((fd * 4,), jnp.float32),
        "w4": conv_w(keys[4], fd * 8, fd * 4, 4),
        "g4": jnp.ones((fd * 8,), jnp.float32),
        "be4": jnp.zeros((fd * 8,), jnp.float32),
        "w5": conv_w(keys[5], 1, fd * 8, 4),
        "b5": jax.random.normal(keys[6], (1,), jnp.float32) * 0.05,
    }


def discriminator_forward(params, x_nchw):
    N = x_nchw.shape[0]
    x = x_nchw.astype(jnp.bfloat16)                    # bf16 MXU operands

    # Layer 1: Conv(C, fd, 4, 2, 1) + bias + LeakyReLU(0.2)
    pt, Ho, Wo = im2col_t(x, 4, 2, 1)
    y = fused_conv(pt, weight_t(params["w1"]), bias=params["b1"])
    x = y.reshape(N, -1, Ho, Wo)                       # NCHW, bf16

    # Blocks 2-3: Conv(bias=False) + InstanceNorm2d(affine) + LeakyReLU(0.2)
    for i in (2, 3):
        pt, Ho, Wo = im2col_t(x, 4, 2, 1)
        y = fused_conv(pt, weight_t(params[f"w{i}"]),
                       gamma=params[f"g{i}"], beta=params[f"be{i}"])
        x = y.reshape(N, -1, Ho, Wo)

    # Block 4 + final Conv(fd*8, 1, 4, 2, 0) folded into one kernel.
    pt, Ho, Wo = im2col_t(x, 4, 2, 1)                  # Ho = Wo = 4
    w5_2d = params["w5"].reshape(params["w5"].shape[1], Ho * Wo)   # (fd*8, 16)
    out = fused_conv(pt, weight_t(params["w4"]),
                     gamma=params["g4"], beta=params["be4"],
                     head_w=w5_2d, head_b=params["b5"])            # (N, 1, 1) f32
    return out.reshape(N, 1, 1, 1)                     # NCHW output


if __name__ == "__main__":
    key = jax.random.PRNGKey(0)
    k_params, k_input = jax.random.split(key)

    channels_img = 3
    features_d = 8
    batch = 2
    spatial = 64  # architecture requires 64x64 -> 1x1 output

    params = init_params(k_params, channels_img, features_d)
    x = jax.random.normal(
        k_input, (batch, channels_img, spatial, spatial), jnp.float32
    )

    fwd = jax.jit(discriminator_forward)
    out = jax.block_until_ready(fwd(params, x))

    assert out.shape == (batch, 1, 1, 1), out.shape
    assert bool(jnp.all(jnp.isfinite(out)))
    print("KERNEL_OK")
</pallas_src>

<mosaic_0001>
module attributes {stable_mosaic.version = 11 : i64} {
  func.func @_fused_conv_kernel(%arg0: i32, %arg1: memref<1x48x1024xbf16, #tpu.memory_space<vmem>>, %arg2: memref<8x48xbf16, #tpu.memory_space<vmem>>, %arg3: memref<8x1xf32, #tpu.memory_space<vmem>>, %arg4: memref<1x8x1024xbf16, #tpu.memory_space<vmem>>) attributes {dimension_semantics = [#tpu.dimension_semantics<parallel>], iteration_bounds = array<i64: 2>, scalar_prefetch = 0 : i64, scratch_operands = 0 : i64, tpu.core_type = #tpu.core_type<tc>, window_params = [{transform_indices = @transform_0, window_bounds = array<i64: 1, 48, 1024>}, {pipeline_mode = #tpu.pipeline_mode<synchronous>, transform_indices = @transform_1, window_bounds = array<i64: 8, 48>}, {pipeline_mode = #tpu.pipeline_mode<synchronous>, transform_indices = @transform_2, window_bounds = array<i64: 8, 1>}, {transform_indices = @transform_3, window_bounds = array<i64: 1, 8, 1024>}]} {
    %c0 = arith.constant 0 : index
    %c0_0 = arith.constant 0 : index
    %0 = vector.load %arg2[%c0, %c0_0] : memref<8x48xbf16, #tpu.memory_space<vmem>>, vector<8x48xbf16>
    %c0_1 = arith.constant 0 : index
    %c0_2 = arith.constant 0 : index
    %c0_3 = arith.constant 0 : index
    %1 = vector.load %arg1[%c0_1, %c0_2, %c0_3] : memref<1x48x1024xbf16, #tpu.memory_space<vmem>>, vector<1x48x1024xbf16>
    %2 = vector.shape_cast %1 : vector<1x48x1024xbf16> to vector<48x1024xbf16>
    %cst = arith.constant dense<0.000000e+00> : vector<8x1024xf32>
    %3 = tpu.matmul %0, %2, %cst {dimension_numbers = #tpu.dot_dimension_numbers<[1], [0], [0], [1], [0, 0, 1, 1], [], []>} : vector<8x48xbf16>, vector<48x1024xbf16>, vector<8x1024xf32> -> vector<8x1024xf32>
    %c0_4 = arith.constant 0 : index
    %c0_5 = arith.constant 0 : index
    %4 = vector.load %arg3[%c0_4, %c0_5] : memref<8x1xf32, #tpu.memory_space<vmem>>, vector<8x1xf32>
    %5 = vector.broadcast %4 : vector<8x1xf32> to vector<8x1024xf32>
    %6 = arith.addf %3, %5 : vector<8x1024xf32>
    %cst_6 = arith.constant 0.000000e+00 : f32
    %7 = vector.broadcast %cst_6 : f32 to vector<8x1024xf32>
    %8 = arith.cmpf oge, %6, %7 : vector<8x1024xf32>
    %cst_7 = arith.constant 2.000000e-01 : f32
    %9 = vector.broadcast %cst_7 : f32 to vector<8x1024xf32>
    %10 = arith.mulf %9, %6 : vector<8x1024xf32>
    %11 = arith.select %8, %6, %10 : vector<8x1024xi1>, vector<8x1024xf32>
    %12 = arith.truncf %11 : vector<8x1024xf32> to vector<8x1024xbf16>
    %c0_8 = arith.constant 0 : index
    %c0_9 = arith.constant 0 : index
    %c0_10 = arith.constant 0 : index
    %13 = vector.load %arg4[%c0_8, %c0_9, %c0_10] : memref<1x8x1024xbf16, #tpu.memory_space<vmem>>, vector<1x8x1024xbf16>
    %14 = vector.shape_cast %13 : vector<1x8x1024xbf16> to vector<8x1024xbf16>
    %15 = vector.shape_cast %12 : vector<8x1024xbf16> to vector<1x8x1024xbf16>
    tpu.vector_store %arg4[%c0_8, %c0_9, %c0_10], %15 {strides = array<i32>} : memref<1x8x1024xbf16, #tpu.memory_space<vmem>>, vector<1x8x1024xbf16>,
    return
  }
  func.func @transform_0(%arg0: i32) -> (i32, i32, i32) {
    %c0_i32 = arith.constant 0 : i32
    %c0_i32_0 = arith.constant 0 : i32
    %c0_i32_1 = arith.constant 0 : i32
    return %arg0, %c0_i32, %c0_i32_0 : i32, i32, i32
  }
  func.func @transform_1(%arg0: i32) -> (i32, i32) {
    %c0_i32 = arith.constant 0 : i32
    %c0_i32_0 = arith.constant 0 : i32
    %c0_i32_1 = arith.constant 0 : i32
    return %c0_i32, %c0_i32_0 : i32, i32
  }
  func.func @transform_2(%arg0: i32) -> (i32, i32) {
    %c0_i32 = arith.constant 0 : i32
    %c0_i32_0 = arith.constant 0 : i32
    %c0_i32_1 = arith.constant 0 : i32
    return %c0_i32, %c0_i32_0 : i32, i32
  }
  func.func @transform_3(%arg0: i32) -> (i32, i32, i32) {
    %c0_i32 = arith.constant 0 : i32
    %c0_i32_0 = arith.constant 0 : i32
    %c0_i32_1 = arith.constant 0 : i32
    return %arg0, %c0_i32, %c0_i32_0 : i32, i32, i32
  }
}

module attributes {stable_mosaic.version = 11 : i64} {
  func.func @_fused_conv_kernel(%arg0: i32, %arg1: memref<1x128x256xbf16, #tpu.memory_space<vmem>>, %arg2: memref<16x128xbf16, #tpu.memory_space<vmem>>, %arg3: memref<16x1xf32, #tpu.memory_space<vmem>>, %arg4: memref<16x1xf32, #tpu.memory_space<vmem>>, %arg5: memref<1x16x256xbf16, #tpu.memory_space<vmem>>) attributes {dimension_semantics = [#tpu.dimension_semantics<parallel>], iteration_bounds = array<i64: 2>, scalar_prefetch = 0 : i64, scratch_operands = 0 : i64, tpu.core_type = #tpu.core_type<tc>, window_params = [{transform_indices = @transform_0, window_bounds = array<i64: 1, 128, 256>}, {pipeline_mode = #tpu.pipeline_mode<synchronous>, transform_indices = @transform_1, window_bounds = array<i64: 16, 128>}, {pipeline_mode = #tpu.pipeline_mode<synchronous>, transform_indices = @transform_2, window_bounds = array<i64: 16, 1>}, {pipeline_mode = #tpu.pipeline_mode<synchronous>, transform_indices = @transform_3, window_bounds = array<i64: 16, 1>}, {transform_indices = @transform_4, window_bounds = array<i64: 1, 16, 256>}]} {
    %c0 = arith.constant 0 : index
    %c0_0 = arith.constant 0 : index
    %0 = vector.load %arg2[%c0, %c0_0] : memref<16x128xbf16, #tpu.memory_space<vmem>>, vector<16x128xbf16>
    %c0_1 = arith.constant 0 : index
    %c0_2 = arith.constant 0 : index
    %c0_3 = arith.constant 0 : index
    %1 = vector.load %arg1[%c0_1, %c0_2, %c0_3] : memref<1x128x256xbf16, #tpu.memory_space<vmem>>, vector<1x128x256xbf16>
    %2 = vector.shape_cast %1 : vector<1x128x256xbf16> to vector<128x256xbf16>
    %cst = arith.constant dense<0.000000e+00> : vector<16x256xf32>
    %3 = tpu.matmul %0, %2, %cst {dimension_numbers = #tpu.dot_dimension_numbers<[1], [0], [0], [1], [0, 0, 1, 1], [], []>} : vector<16x128xbf16>, vector<128x256xbf16>, vector<16x256xf32> -> vector<16x256xf32>
    %cst_4 = arith.constant dense<0.000000e+00> : vector<16xf32>
    %4 = vector.multi_reduction <add>, %3, %cst_4 [1] : vector<16x256xf32> to vector<16xf32>
    %5 = vector.shape_cast %4 : vector<16xf32> to vector<16x1xf32>
    %cst_5 = arith.constant 2.560000e+02 : f32
    %6 = vector.broadcast %cst_5 : f32 to vector<16x1xf32>
    %7 = arith.divf %5, %6 : vector<16x1xf32>
    %8 = vector.broadcast %7 : vector<16x1xf32> to vector<16x256xf32>
    %9 = arith.subf %3, %8 : vector<16x256xf32>
    %10 = arith.mulf %9, %9 : vector<16x256xf32>
    %cst_6 = arith.constant dense<0.000000e+00> : vector<16xf32>
    %11 = vector.multi_reduction <add>, %10, %cst_6 [1] : vector<16x256xf32> to vector<16xf32>
    %12 = vector.shape_cast %11 : vector<16xf32> to vector<16x1xf32>
    %cst_7 = arith.constant 2.560000e+02 : f32
    %13 = vector.broadcast %cst_7 : f32 to vector<16x1xf32>
    %14 = arith.divf %12, %13 : vector<16x1xf32>
    %15 = vector.broadcast %7 : vector<16x1xf32> to vector<16x256xf32>
    %16 = arith.subf %3, %15 : vector<16x256xf32>
    %cst_8 = arith.constant 9.99999974E-6 : f32
    %17 = vector.broadcast %cst_8 : f32 to vector<16x1xf32>
    %18 = arith.addf %14, %17 : vector<16x1xf32>
    %19 = math.rsqrt %18 : vector<16x1xf32>
    %20 = vector.broadcast %19 : vector<16x1xf32> to vector<16x256xf32>
    %21 = arith.mulf %16, %20 : vector<16x256xf32>
    %c0_9 = arith.constant 0 : index
    %c0_10 = arith.constant 0 : index
    %22 = vector.load %arg3[%c0_9, %c0_10] : memref<16x1xf32, #tpu.memory_space<vmem>>, vector<16x1xf32>
    %23 = vector.broadcast %22 : vector<16x1xf32> to vector<16x256xf32>
    %24 = arith.mulf %21, %23 : vector<16x256xf32>
    %c0_11 = arith.constant 0 : index
    %c0_12 = arith.constant 0 : index
    %25 = vector.load %arg4[%c0_11, %c0_12] : memref<16x1xf32, #tpu.memory_space<vmem>>, vector<16x1xf32>
    %26 = vector.broadcast %25 : vector<16x1xf32> to vector<16x256xf32>
    %27 = arith.addf %24, %26 : vector<16x256xf32>
    %cst_13 = arith.constant 0.000000e+00 : f32
    %28 = vector.broadcast %cst_13 : f32 to vector<16x256xf32>
    %29 = arith.cmpf oge, %27, %28 : vector<16x256xf32>
    %cst_14 = arith.constant 2.000000e-01 : f32
    %30 = vector.broadcast %cst_14 : f32 to vector<16x256xf32>
    %31 = arith.mulf %30, %27 : vector<16x256xf32>
    %32 = arith.select %29, %27, %31 : vector<16x256xi1>, vector<16x256xf32>
    %33 = arith.truncf %32 : vector<16x256xf32> to vector<16x256xbf16>
    %c0_15 = arith.constant 0 : index
    %c0_16 = arith.constant 0 : index
    %c0_17 = arith.constant 0 : index
    %34 = vector.load %arg5[%c0_15, %c0_16, %c0_17] : memref<1x16x256xbf16, #tpu.memory_space<vmem>>, vector<1x16x256xbf16>
    %35 = vector.shape_cast %34 : vector<1x16x256xbf16> to vector<16x256xbf16>
    %36 = vector.shape_cast %33 : vector<16x256xbf16> to vector<1x16x256xbf16>
    tpu.vector_store %arg5[%c0_15, %c0_16, %c0_17], %36 {strides = array<i32>} : memref<1x16x256xbf16, #tpu.memory_space<vmem>>, vector<1x16x256xbf16>,
    return
  }
  func.func @transform_0(%arg0: i32) -> (i32, i32, i32) {
    %c0_i32 = arith.constant 0 : i32
    %c0_i32_0 = arith.constant 0 : i32
    %c0_i32_1 = arith.constant 0 : i32
    return %arg0, %c0_i32, %c0_i32_0 : i32, i32, i32
  }
  func.func @transform_1(%arg0: i32) -> (i32, i32) {
    %c0_i32 = arith.constant 0 : i32
    %c0_i32_0 = arith.constant 0 : i32
    %c0_i32_1 = arith.constant 0 : i32
    return %c0_i32, %c0_i32_0 : i32, i32
  }
  func.func @transform_2(%arg0: i32) -> (i32, i32) {
    %c0_i32 = arith.constant 0 : i32
    %c0_i32_0 = arith.constant 0 : i32
    %c0_i32_1 = arith.constant 0 : i32
    return %c0_i32, %c0_i32_0 : i32, i32
  }
  func.func @transform_3(%arg0: i32) -> (i32, i32) {
    %c0_i32 = arith.constant 0 : i32
    %c0_i32_0 = arith.constant 0 : i32
    %c0_i32_1 = arith.constant 0 : i32
    return %c0_i32, %c0_i32_0 : i32, i32
  }
  func.func @transform_4(%arg0: i32) -> (i32, i32, i32) {
    %c0_i32 = arith.constant 0 : i32
    %c0_i32_0 = arith.constant 0 : i32
    %c0_i32_1 = arith.constant 0 : i32
    return %arg0, %c0_i32, %c0_i32_0 : i32, i32, i32
  }
}

module attributes {stable_mosaic.version = 11 : i64} {
  func.func @_fused_conv_kernel(%arg0: i32, %arg1: memref<1x256x64xbf16, #tpu.memory_space<vmem>>, %arg2: memref<32x256xbf16, #tpu.memory_space<vmem>>, %arg3: memref<32x1xf32, #tpu.memory_space<vmem>>, %arg4: memref<32x1xf32, #tpu.memory_space<vmem>>, %arg5: memref<1x32x64xbf16, #tpu.memory_space<vmem>>) attributes {dimension_semantics = [#tpu.dimension_semantics<parallel>], iteration_bounds = array<i64: 2>, scalar_prefetch = 0 : i64, scratch_operands = 0 : i64, tpu.core_type = #tpu.core_type<tc>, window_params = [{transform_indices = @transform_0, window_bounds = array<i64: 1, 256, 64>}, {pipeline_mode = #tpu.pipeline_mode<synchronous>, transform_indices = @transform_1, window_bounds = array<i64: 32, 256>}, {pipeline_mode = #tpu.pipeline_mode<synchronous>, transform_indices = @transform_2, window_bounds = array<i64: 32, 1>}, {pipeline_mode = #tpu.pipeline_mode<synchronous>, transform_indices = @transform_3, window_bounds = array<i64: 32, 1>}, {transform_indices = @transform_4, window_bounds = array<i64: 1, 32, 64>}]} {
    %c0 = arith.constant 0 : index
    %c0_0 = arith.constant 0 : index
    %0 = vector.load %arg2[%c0, %c0_0] : memref<32x256xbf16, #tpu.memory_space<vmem>>, vector<32x256xbf16>
    %c0_1 = arith.constant 0 : index
    %c0_2 = arith.constant 0 : index
    %c0_3 = arith.constant 0 : index
    %1 = vector.load %arg1[%c0_1, %c0_2, %c0_3] : memref<1x256x64xbf16, #tpu.memory_space<vmem>>, vector<1x256x64xbf16>
    %2 = vector.shape_cast %1 : vector<1x256x64xbf16> to vector<256x64xbf16>
    %cst = arith.constant dense<0.000000e+00> : vector<32x64xf32>
    %3 = tpu.matmul %0, %2, %cst {dimension_numbers = #tpu.dot_dimension_numbers<[1], [0], [0], [1], [0, 0, 1, 1], [], []>} : vector<32x256xbf16>, vector<256x64xbf16>, vector<32x64xf32> -> vector<32x64xf32>
    %cst_4 = arith.constant dense<0.000000e+00> : vector<32xf32>
    %4 = vector.multi_reduction <add>, %3, %cst_4 [1] : vector<32x64xf32> to vector<32xf32>
    %5 = vector.shape_cast %4 : vector<32xf32> to vector<32x1xf32>
    %cst_5 = arith.constant 6.400000e+01 : f32
    %6 = vector.broadcast %cst_5 : f32 to vector<32x1xf32>
    %7 = arith.divf %5, %6 : vector<32x1xf32>
    %8 = vector.broadcast %7 : vector<32x1xf32> to vector<32x64xf32>
    %9 = arith.subf %3, %8 : vector<32x64xf32>
    %10 = arith.mulf %9, %9 : vector<32x64xf32>
    %cst_6 = arith.constant dense<0.000000e+00> : vector<32xf32>
    %11 = vector.multi_reduction <add>, %10, %cst_6 [1] : vector<32x64xf32> to vector<32xf32>
    %12 = vector.shape_cast %11 : vector<32xf32> to vector<32x1xf32>
    %cst_7 = arith.constant 6.400000e+01 : f32
    %13 = vector.broadcast %cst_7 : f32 to vector<32x1xf32>
    %14 = arith.divf %12, %13 : vector<32x1xf32>
    %15 = vector.broadcast %7 : vector<32x1xf32> to vector<32x64xf32>
    %16 = arith.subf %3, %15 : vector<32x64xf32>
    %cst_8 = arith.constant 9.99999974E-6 : f32
    %17 = vector.broadcast %cst_8 : f32 to vector<32x1xf32>
    %18 = arith.addf %14, %17 : vector<32x1xf32>
    %19 = math.rsqrt %18 : vector<32x1xf32>
    %20 = vector.broadcast %19 : vector<32x1xf32> to vector<32x64xf32>
    %21 = arith.mulf %16, %20 : vector<32x64xf32>
    %c0_9 = arith.constant 0 : index
    %c0_10 = arith.constant 0 : index
    %22 = vector.load %arg3[%c0_9, %c0_10] : memref<32x1xf32, #tpu.memory_space<vmem>>, vector<32x1xf32>
    %23 = vector.broadcast %22 : vector<32x1xf32> to vector<32x64xf32>
    %24 = arith.mulf %21, %23 : vector<32x64xf32>
    %c0_11 = arith.constant 0 : index
    %c0_12 = arith.constant 0 : index
    %25 = vector.load %arg4[%c0_11, %c0_12] : memref<32x1xf32, #tpu.memory_space<vmem>>, vector<32x1xf32>
    %26 = vector.broadcast %25 : vector<32x1xf32> to vector<32x64xf32>
    %27 = arith.addf %24, %26 : vector<32x64xf32>
    %cst_13 = arith.constant 0.000000e+00 : f32
    %28 = vector.broadcast %cst_13 : f32 to vector<32x64xf32>
    %29 = arith.cmpf oge, %27, %28 : vector<32x64xf32>
    %cst_14 = arith.constant 2.000000e-01 : f32
    %30 = vector.broadcast %cst_14 : f32 to vector<32x64xf32>
    %31 = arith.mulf %30, %27 : vector<32x64xf32>
    %32 = arith.select %29, %27, %31 : vector<32x64xi1>, vector<32x64xf32>
    %33 = arith.truncf %32 : vector<32x64xf32> to vector<32x64xbf16>
    %c0_15 = arith.constant 0 : index
    %c0_16 = arith.constant 0 : index
    %c0_17 = arith.constant 0 : index
    %34 = vector.load %arg5[%c0_15, %c0_16, %c0_17] : memref<1x32x64xbf16, #tpu.memory_space<vmem>>, vector<1x32x64xbf16>
    %35 = vector.shape_cast %34 : vector<1x32x64xbf16> to vector<32x64xbf16>
    %36 = vector.shape_cast %33 : vector<32x64xbf16> to vector<1x32x64xbf16>
    tpu.vector_store %arg5[%c0_15, %c0_16, %c0_17], %36 {strides = array<i32>} : memref<1x32x64xbf16, #tpu.memory_space<vmem>>, vector<1x32x64xbf16>,
    return
  }
  func.func @transform_0(%arg0: i32) -> (i32, i32, i32) {
    %c0_i32 = arith.constant 0 : i32
    %c0_i32_0 = arith.constant 0 : i32
    %c0_i32_1 = arith.constant 0 : i32
    return %arg0, %c0_i32, %c0_i32_0 : i32, i32, i32
  }
  func.func @transform_1(%arg0: i32) -> (i32, i32) {
    %c0_i32 = arith.constant 0 : i32
    %c0_i32_0 = arith.constant 0 : i32
    %c0_i32_1 = arith.constant 0 : i32
    return %c0_i32, %c0_i32_0 : i32, i32
  }
  func.func @transform_2(%arg0: i32) -> (i32, i32) {
    %c0_i32 = arith.constant 0 : i32
    %c0_i32_0 = arith.constant 0 : i32
    %c0_i32_1 = arith.constant 0 : i32
    return %c0_i32, %c0_i32_0 : i32, i32
  }
  func.func @transform_3(%arg0: i32) -> (i32, i32) {
    %c0_i32 = arith.constant 0 : i32
    %c0_i32_0 = arith.constant 0 : i32
    %c0_i32_1 = arith.constant 0 : i32
    return %c0_i32, %c0_i32_0 : i32, i32
  }
  func.func @transform_4(%arg0: i32) -> (i32, i32, i32) {
    %c0_i32 = arith.constant 0 : i32
    %c0_i32_0 = arith.constant 0 : i32
    %c0_i32_1 = arith.constant 0 : i32
    return %arg0, %c0_i32, %c0_i32_0 : i32, i32, i32
  }
}

module attributes {stable_mosaic.version = 11 : i64} {
  func.func @_fused_conv_kernel(%arg0: i32, %arg1: memref<1x512x16xbf16, #tpu.memory_space<vmem>>, %arg2: memref<64x512xbf16, #tpu.memory_space<vmem>>, %arg3: memref<64x1xf32, #tpu.memory_space<vmem>>, %arg4: memref<64x1xf32, #tpu.memory_space<vmem>>, %arg5: memref<64x16xf32, #tpu.memory_space<vmem>>, %arg6: memref<1x1xf32, #tpu.memory_space<vmem>>, %arg7: memref<1x1x1xf32, #tpu.memory_space<vmem>>) attributes {dimension_semantics = [#tpu.dimension_semantics<parallel>], iteration_bounds = array<i64: 2>, scalar_prefetch = 0 : i64, scratch_operands = 0 : i64, tpu.core_type = #tpu.core_type<tc>, window_params = [{transform_indices = @transform_0, window_bounds = array<i64: 1, 512, 16>}, {pipeline_mode = #tpu.pipeline_mode<synchronous>, transform_indices = @transform_1, window_bounds = array<i64: 64, 512>}, {pipeline_mode = #tpu.pipeline_mode<synchronous>, transform_indices = @transform_2, window_bounds = array<i64: 64, 1>}, {pipeline_mode = #tpu.pipeline_mode<synchronous>, transform_indices = @transform_3, window_bounds = array<i64: 64, 1>}, {pipeline_mode = #tpu.pipeline_mode<synchronous>, transform_indices = @transform_4, window_bounds = array<i64: 64, 16>}, {pipeline_mode = #tpu.pipeline_mode<synchronous>, transform_indices = @transform_5, window_bounds = array<i64: 1, 1>}, {transform_indices = @transform_6, window_bounds = array<i64: 1, 1, 1>}]} {
    %c0 = arith.constant 0 : index
    %c0_0 = arith.constant 0 : index
    %0 = vector.load %arg2[%c0, %c0_0] : memref<64x512xbf16, #tpu.memory_space<vmem>>, vector<64x512xbf16>
    %c0_1 = arith.constant 0 : index
    %c0_2 = arith.constant 0 : index
    %c0_3 = arith.constant 0 : index
    %1 = vector.load %arg1[%c0_1, %c0_2, %c0_3] : memref<1x512x16xbf16, #tpu.memory_space<vmem>>, vector<1x512x16xbf16>
    %2 = vector.shape_cast %1 : vector<1x512x16xbf16> to vector<512x16xbf16>
    %cst = arith.constant dense<0.000000e+00> : vector<64x16xf32>
    %3 = tpu.matmul %0, %2, %cst {dimension_numbers = #tpu.dot_dimension_numbers<[1], [0], [0], [1], [0, 0, 1, 1], [], []>} : vector<64x512xbf16>, vector<512x16xbf16>, vector<64x16xf32> -> vector<64x16xf32>
    %cst_4 = arith.constant dense<0.000000e+00> : vector<64xf32>
    %4 = vector.multi_reduction <add>, %3, %cst_4 [1] : vector<64x16xf32> to vector<64xf32>
    %5 = vector.shape_cast %4 : vector<64xf32> to vector<64x1xf32>
    %cst_5 = arith.constant 1.600000e+01 : f32
    %6 = vector.broadcast %cst_5 : f32 to vector<64x1xf32>
    %7 = arith.divf %5, %6 : vector<64x1xf32>
    %8 = vector.broadcast %7 : vector<64x1xf32> to vector<64x16xf32>
    %9 = arith.subf %3, %8 : vector<64x16xf32>
    %10 = arith.mulf %9, %9 : vector<64x16xf32>
    %cst_6 = arith.constant dense<0.000000e+00> : vector<64xf32>
    %11 = vector.multi_reduction <add>, %10, %cst_6 [1] : vector<64x16xf32> to vector<64xf32>
    %12 = vector.shape_cast %11 : vector<64xf32> to vector<64x1xf32>
    %cst_7 = arith.constant 1.600000e+01 : f32
    %13 = vector.broadcast %cst_7 : f32 to vector<64x1xf32>
    %14 = arith.divf %12, %13 : vector<64x1xf32>
    %15 = vector.broadcast %7 : vector<64x1xf32> to vector<64x16xf32>
    %16 = arith.subf %3, %15 : vector<64x16xf32>
    %cst_8 = arith.constant 9.99999974E-6 : f32
    %17 = vector.broadcast %cst_8 : f32 to vector<64x1xf32>
    %18 = arith.addf %14, %17 : vector<64x1xf32>
    %19 = math.rsqrt %18 : vector<64x1xf32>
    %20 = vector.broadcast %19 : vector<64x1xf32> to vector<64x16xf32>
    %21 = arith.mulf %16, %20 : vector<64x16xf32>
    %c0_9 = arith.constant 0 : index
    %c0_10 = arith.constant 0 : index
    %22 = vector.load %arg3[%c0_9, %c0_10] : memref<64x1xf32, #tpu.memory_space<vmem>>, vector<64x1xf32>
    %23 = vector.broadcast %22 : vector<64x1xf32> to vector<64x16xf32>
    %24 = arith.mulf %21, %23 : vector<64x16xf32>
    %c0_11 = arith.constant 0 : index
    %c0_12 = arith.constant 0 : index
    %25 = vector.load %arg4[%c0_11, %c0_12] : memref<64x1xf32, #tpu.memory_space<vmem>>, vector<64x1xf32>
    %26 = vector.broadcast %25 : vector<64x1xf32> to vector<64x16xf32>
    %27 = arith.addf %24, %26 : vector<64x16xf32>
    %cst_13 = arith.constant 0.000000e+00 : f32
    %28 = vector.broadcast %cst_13 : f32 to vector<64x16xf32>
    %29 = arith.cmpf oge, %27, %28 : vector<64x16xf32>
    %cst_14 = arith.constant 2.000000e-01 : f32
    %30 = vector.broadcast %cst_14 : f32 to vector<64x16xf32>
    %31 = arith.mulf %30, %27 : vector<64x16xf32>
    %32 = arith.select %29, %27, %31 : vector<64x16xi1>, vector<64x16xf32>
    %c0_15 = arith.constant 0 : index
    %c0_16 = arith.constant 0 : index
    %33 = vector.load %arg5[%c0_15, %c0_16] : memref<64x16xf32, #tpu.memory_space<vmem>>, vector<64x16xf32>
    %34 = arith.mulf %32, %33 : vector<64x16xf32>
    %35 = vector.shape_cast %34 : vector<64x16xf32> to vector<1x64x16xf32>
    %cst_17 = arith.constant dense<0.000000e+00> : vector<1xf32>
    %36 = vector.multi_reduction <add>, %35, %cst_17 [1, 2] : vector<1x64x16xf32> to vector<1xf32>
    %37 = vector.shape_cast %36 : vector<1xf32> to vector<1x1x1xf32>
    %38 = vector.extract %37[0, 0, 0] : f32 from vector<1x1x1xf32>
    %39 = vector.broadcast %38 : f32 to vector<1x1xf32>
    %c0_18 = arith.constant 0 : index
    %c0_19 = arith.constant 0 : index
    %40 = vector.load %arg6[%c0_18, %c0_19] : memref<1x1xf32, #tpu.memory_space<vmem>>, vector<1x1xf32>
    %41 = arith.addf %39, %40 : vector<1x1xf32>
    %c0_20 = arith.constant 0 : index
    %c0_21 = arith.constant 0 : index
    %c0_22 = arith.constant 0 : index
    %42 = vector.load %arg7[%c0_20, %c0_21, %c0_22] : memref<1x1x1xf32, #tpu.memory_space<vmem>>, vector<1x1x1xf32>
    %43 = vector.shape_cast %42 : vector<1x1x1xf32> to vector<1x1xf32>
    %44 = vector.shape_cast %41 : vector<1x1xf32> to vector<1x1x1xf32>
    tpu.vector_store %arg7[%c0_20, %c0_21, %c0_22], %44 {strides = array<i32>} : memref<1x1x1xf32, #tpu.memory_space<vmem>>, vector<1x1x1xf32>,
    return
  }
  func.func @transform_0(%arg0: i32) -> (i32, i32, i32) {
    %c0_i32 = arith.constant 0 : i32
    %c0_i32_0 = arith.constant 0 : i32
    %c0_i32_1 = arith.constant 0 : i32
    return %arg0, %c0_i32, %c0_i32_0 : i32, i32, i32
  }
  func.func @transform_1(%arg0: i32) -> (i32, i32) {
    %c0_i32 = arith.constant 0 : i32
    %c0_i32_0 = arith.constant 0 : i32
    %c0_i32_1 = arith.constant 0 : i32
    return %c0_i32, %c0_i32_0 : i32, i32
  }
  func.func @transform_2(%arg0: i32) -> (i32, i32) {
    %c0_i32 = arith.constant 0 : i32
    %c0_i32_0 = arith.constant 0 : i32
    %c0_i32_1 = arith.constant 0 : i32
    return %c0_i32, %c0_i32_0 : i32, i32
  }
  func.func @transform_3(%arg0: i32) -> (i32, i32) {
    %c0_i32 = arith.constant 0 : i32
    %c0_i32_0 = arith.constant 0 : i32
    %c0_i32_1 = arith.constant 0 : i32
    return %c0_i32, %c0_i32_0 : i32, i32
  }
  func.func @transform_4(%arg0: i32) -> (i32, i32) {
    %c0_i32 = arith.constant 0 : i32
    %c0_i32_0 = arith.constant 0 : i32
    %c0_i32_1 = arith.constant 0 : i32
    return %c0_i32, %c0_i32_0 : i32, i32
  }
  func.func @transform_5(%arg0: i32) -> (i32, i32) {
    %c0_i32 = arith.constant 0 : i32
    %c0_i32_0 = arith.constant 0 : i32
    %c0_i32_1 = arith.constant 0 : i32
    return %c0_i32, %c0_i32_0 : i32, i32
  }
  func.func @transform_6(%arg0: i32) -> (i32, i32, i32) {
    %c0_i32 = arith.constant 0 : i32
    %c0_i32_0 = arith.constant 0 : i32
    %c0_i32_1 = arith.constant 0 : i32
    return %arg0, %c0_i32, %c0_i32_0 : i32, i32, i32
  }
}

</mosaic_0001>

<bundles_post_ra>
// kernel: discriminator_forward.4
= control target key start
LH: loop header
LB: loop body
LE: loop exit
PB: predicated region body
PF: predicated region fallthrough
CT: control target
= control target key end

     0   :  { %s693_s12 = smov 0   ;;  %s761_s0 = inlined_call_operand.vmem [shape: bf16[2,48,1024], index: 0, kind: input, shape index: {}]   ;;  %s762_s1 = inlined_call_operand.vmem [shape: bf16[8,48], index: 1, kind: input, shape index: {}]   ;;  %s763_s2 = inlined_call_operand.vmem [shape: f32[8,1], index: 2, kind: input, shape index: {}]   ;;  %s764_s3 = inlined_call_operand.vmem [shape: bf16[2,8,1024], index: 3, kind: output, shape index: {}]  }
   0x1 LB: > { %s606_s13 = sadd.s32 4294967295, %s670_s12   ;;  %p610_p0 = scmp.ge.s32.totalorder %s670_s12, 1  ;;  %s670_s12 = sphi %s693_s12, %s13_s12  }
   0x2   : > { %p137_p1 = scmp.lt.s32.totalorder %s670_s12, 3 }
   0x4   : > { %p138_p2 = pnand %p610_p0, %p137_p1 }
   0x5   : > { %p161_p3 = scmp.lt.s32.totalorder (!%p138_p2), %s606_s13, 1  ;;  %v197_v0 = vld [vmem:[%s763_s2] sm:$0xff] (!%p138_p2)  ;;  %v672_v1 = vmov (!%p138_p2), 0   ;;  %vm323_vm0 = vcmask (!%p138_p2), 392192  }
   0x6   : > { %141 = sbr.rel (%p138_p2) target bundleno = 267 (0x10b), region = 32  ;;  %359 = vmatprep.mubr.bf16.mxu0 (!%p138_p2), %v672_v1  ;;  %400 = vmatprep.mubr.bf16.mxu1 (!%p138_p2), %v672_v1  ;;  %v172_v36 = vld [vmem:[%s762_s1] sm:$0xf] (!%p138_p2) }
   0x7   : > { %663 = vset.pattern.permute.xlu0 (!%p138_p2), %v672_v1 }
   0x8   : > { %200 = vperm.xlu0 (!%p138_p2), %663, %v197_v0  }
   0xd   : > { %s766_s13 = smov (!%p161_p3, %s606_s13), 1 }
   0xe   : > { %s653_s16 = smul.u32 192, %s766_s13  ;;  %s648_s22 = sshll.u32 %s766_s13, 5 }
   0xf   : > { %s752_s25 = scalar_lea.vmem %s764_s3, %s648_s22 }
  0x10   : > { %s713_s19 = scalar_lea.vmem %s761_s0, %s653_s16 }
  0x11   : > { %v173_v2 = vld [vmem:[%s713_s19] sm:$0xff]  ;;  %v174_v4 = vld [vmem:[%s713_s19 + $0x8] sm:$0xff]  ;;  %v175_v24 = vld [vmem:[%s713_s19 + $0x10] sm:$0xff] }
  0x12   : > { %v177_v3 = vld [vmem:[%s713_s19 + $0x20] sm:$0xff]  ;;  %v178_v6 = vld [vmem:[%s713_s19 + $0x28] sm:$0xff]  ;;  %v179_v25 = vld [vmem:[%s713_s19 + $0x30] sm:$0xff] }
  0x13   : > { %v615_v5 = vcombine.high %v173_v2, %v177_v3  ;;  %v614_v7 = vcombine.low %v173_v2, %v177_v3  ;;  %v181_v8 = vld [vmem:[%s713_s19 + $0x40] sm:$0xff]  ;;  %v617_v10 = vcombine.high %v174_v4, %v178_v6  ;;  %v616_v11 = vcombine.low %v174_v4, %v178_v6  ;;  %v182_v13 = vld [vmem:[%s713_s19 + $0x48] sm:$0xff]  ;;  %v176_v26 = vld [vmem:[%s713_s19 + $0x18] sm:$0xff] }
  0x14   : > { %v185_v9 = vld [vmem:[%s713_s19 + $0x60] sm:$0xff]  ;;  %v186_v14 = vld [vmem:[%s713_s19 + $0x68] sm:$0xff]  ;;  %v180_v27 = vld [vmem:[%s713_s19 + $0x38] sm:$0xff]  ;;  %v619_v30 = vcombine.high %v175_v24, %v179_v25  ;;  %v618_v37 = vcombine.low %v175_v24, %v179_v25 }
  0x15   : > { %v623_v12 = vcombine.high %v181_v8, %v185_v9  ;;  %v189_v15 = vld [vmem:[%s713_s19 + $0x80] sm:$0xff]  ;;  %327 = vmatprep.subr.bf16.mxu0 %v615_v5  ;;  %v625_v16 = vcombine.high %v182_v13, %v186_v14  ;;  %v190_v18 = vld [vmem:[%s713_s19 + $0x88] sm:$0xff]  ;;  %368 = vmatprep.subr.bf16.mxu1 %v617_v10  ;;  %v622_v20 = vcombine.low %v181_v8, %v185_v9  ;;  %v183_v32 = vld [vmem:[%s713_s19 + $0x50] sm:$0xff] }
  0x16   : > { %v193_v17 = vld [vmem:[%s713_s19 + $0xa0] sm:$0xff]  ;;  %v194_v19 = vld [vmem:[%s713_s19 + $0xa8] sm:$0xff]  ;;  %328 = vmatpush1.bf16.msra.mxu0 %v614_v7  ;;  %369 = vmatpush1.bf16.msra.mxu1 %v616_v11  ;;  %v624_v21 = vcombine.low %v182_v13, %v186_v14  ;;  %v621_v31 = vcombine.high %v176_v26, %v180_v27  ;;  %v187_v33 = vld [vmem:[%s713_s19 + $0x70] sm:$0xff]  ;;  %v620_v38 = vcombine.low %v176_v26, %v180_v27 }
  0x17   : > { %329 = vmatprep.subr.bf16.mxu0 %v623_v12  ;;  %v631_v22 = vcombine.high %v189_v15, %v193_v17  ;;  %370 = vmatprep.subr.bf16.mxu1 %v625_v16  ;;  %v633_v23 = vcombine.high %v190_v18, %v194_v19  ;;  %v630_v28 = vcombine.low %v189_v15, %v193_v17  ;;  %v184_v34 = vld [vmem:[%s713_s19 + $0x58] sm:$0xff]  ;;  %v191_v41 = vld [vmem:[%s713_s19 + $0x90] sm:$0xff] }
  0x18   : > { %v632_v29 = vcombine.low %v190_v18, %v194_v19  ;;  %v188_v35 = vld [vmem:[%s713_s19 + $0x78] sm:$0xff]  ;;  %v627_v39 = vcombine.high %v183_v32, %v187_v33  ;;  %v195_v42 = vld [vmem:[%s713_s19 + $0xb0] sm:$0xff]  ;;  %v626_v45 = vcombine.low %v183_v32, %v187_v33 }
  0x19   : > { %v629_v40 = vcombine.high %v184_v34, %v188_v35  ;;  %v192_v43 = vld [vmem:[%s713_s19 + $0x98] sm:$0xff]  ;;  %v628_v46 = vcombine.low %v184_v34, %v188_v35  ;;  %v635_v47 = vcombine.high %v191_v41, %v195_v42  ;;  %v634_v49 = vcombine.low %v191_v41, %v195_v42 }
  0x1a   : > { %330 = vmatpush1.bf16.msra.mxu0 %v622_v20  ;;  %371 = vmatpush1.bf16.msra.mxu1 %v624_v21  ;;  %v196_v44 = vld [vmem:[%s713_s19 + $0xb8] sm:$0xff] }
  0x1b   : > { %331 = vmatprep.subr.bf16.mxu0 %v631_v22  ;;  %372 = vmatprep.subr.bf16.mxu1 %v633_v23  ;;  %v637_v48 = vcombine.high %v192_v43, %v196_v44  ;;  %v636_v50 = vcombine.low %v192_v43, %v196_v44 }
  0x1e   : > { %332 = vmatpush1.bf16.msra.mxu0 %v630_v28  ;;  %373 = vmatpush1.bf16.msra.mxu1 %v632_v29 }
  0x1f   : > { %409 = vmatprep.subr.bf16.mxu0 %v619_v30  ;;  %450 = vmatprep.subr.bf16.mxu1 %v621_v31 }
  0x21   : > { %638 = vmatmul.mubr.msk.bf16.vlgmr.msra.gmra.mrb[0].mxu0 %vm323_vm0, %v172_v36  ;;  %639 = vmatmul.mubr.msk.bf16.vlgmr.msra.gmra.mrb[0].mxu1 %vm323_vm0, %v172_v36 }
  0x22   : > { %410 = vmatpush1.bf16.msra.mxu0 %v618_v37  ;;  %451 = vmatpush1.bf16.msra.mxu1 %v620_v38 }
  0x23   : > { %411 = vmatprep.subr.bf16.mxu0 %v627_v39  ;;  %452 = vmatprep.subr.bf16.mxu1 %v629_v40 }
  0x24   : > { %441 = vmatprep.mubr.bf16.mxu0 %v672_v1  ;;  %482 = vmatprep.mubr.bf16.mxu1 %v672_v1 }
  0x26   : > { %412 = vmatpush1.bf16.msra.mxu0 %v626_v45  ;;  %453 = vmatpush1.bf16.msra.mxu1 %v628_v46 }
  0x27   : > { %413 = vmatprep.subr.bf16.mxu0 %v635_v47  ;;  %454 = vmatprep.subr.bf16.mxu1 %v637_v48 }
  0x2a   : > { %414 = vmatpush1.bf16.msra.mxu0 %v634_v49  ;;  %455 = vmatpush1.bf16.msra.mxu1 %v636_v50 }
  0x2d   : > { %640 = vmatmul.mubr.msk.bf16.vlgmr.msra.gmra.mrb[4].mxu0 %vm323_vm0, %v172_v36  ;;  %641 = vmatmul.mubr.msk.bf16.vlgmr.msra.gmra.mrb[4].mxu1 %vm323_vm0, %v172_v36 }
  0x87   : > { %v201_v51 = vpop.permute.xlu0 %200 }
  0xf4   : > { %v361_v52 = vpop.f32.mrb[0].mxu0  ;;  %v402_v54 = vpop.f32.mrb[0].mxu1 }
  0xf5   : > { %v362_v53 = vadd.f32 %v361_v52, %v201_v51  ;;  %v363_v55 = vpop.f32.mrb[1].mxu0  ;;  %v403_v56 = vadd.f32 %v402_v54, %v201_v51  ;;  %v404_v58 = vpop.f32.mrb[1].mxu1 }
  0xf6   : > { %v364_v57 = vadd.f32 %v363_v55, %v201_v51  ;;  %v365_v59 = vpop.f32.mrb[2].mxu0  ;;  %v405_v61 = vadd.f32 %v404_v58, %v201_v51  ;;  %v406_v62 = vpop.f32.mrb[2].mxu1 }
  0xf7   : > { %vm491_vm1 = vcmp.ge.f32.partialorder %v362_v53, 0.0  ;;  %v499_v60 = vmul.f32 0.2, %v362_v53  ;;  %v366_v63 = vpop.f32.mrb[3].mxu0  ;;  %vm493_vm2 = vcmp.ge.f32.partialorder %v403_v56, 0.0  ;;  %v407_v4 = vpop.f32.mrb[3].mxu1 }
  0xf8   : > { %v501_v0 = vmul.f32 0.2, %v403_v56  ;;  %vm492_vm3 = vcmp.ge.f32.partialorder %v364_v57, 0.0  ;;  %v500_v1 = vmul.f32 0.2, %v364_v57  ;;  %vm494_vm4 = vcmp.ge.f32.partialorder %v405_v61, 0.0 }
  0xf9   : > { %v507_v2 = vsel %vm491_vm1, %v362_v53, %v499_v60  ;;  %v502_v3 = vmul.f32 0.2, %v405_v61 }
  0xfa   : > { %v509_v5 = vsel %vm493_vm2, %v403_v56, %v501_v0  ;;  %v508_v6 = vsel %vm492_vm3, %v364_v57, %v500_v1 }
  0xfb   : > { %v649_v7 = vpack.c.bf16 %v508_v6, %v507_v2  ;;  %v510_v8 = vsel %vm494_vm4, %v405_v61, %v502_v3 }
  0xfc   : > { %v650_v9 = vpack.c.bf16 %v510_v8, %v509_v5 }
  0xfd   : > { %547 = vst [vmem:[%s752_s25] sm:$0xff] %v649_v7 }
  0xfe   : > { %548 = vst [vmem:[%s752_s25 + $0x8] sm:$0xff] %v650_v9 }
 0x100   : > { %v443_v10 = vpop.f32.mrb[4].mxu0  ;;  %v484_v12 = vpop.f32.mrb[4].mxu1 }
 0x101   : > { %v444_v11 = vadd.f32 %v443_v10, %v201_v51  ;;  %v445_v13 = vpop.f32.mrb[5].mxu0  ;;  %v485_v14 = vadd.f32 %v484_v12, %v201_v51  ;;  %v486_v16 = vpop.f32.mrb[5].mxu1 }
 0x102   : > { %v446_v15 = vadd.f32 %v445_v13, %v201_v51  ;;  %v447_v17 = vpop.f32.mrb[6].mxu0  ;;  %v487_v19 = vadd.f32 %v486_v16, %v201_v51  ;;  %v488_v20 = vpop.f32.mrb[6].mxu1 }
 0x103   : > { %vm495_vm5 = vcmp.ge.f32.partialorder %v444_v11, 0.0  ;;  %v503_v18 = vmul.f32 0.2, %v444_v11  ;;  %v448_v21 = vpop.f32.mrb[7].mxu0  ;;  %vm497_vm6 = vcmp.ge.f32.partialorder %v485_v14, 0.0  ;;  %v489_v26 = vpop.f32.mrb[7].mxu1 }
 0x104   : > { %v505_v22 = vmul.f32 0.2, %v485_v14  ;;  %vm496_vm7 = vcmp.ge.f32.partialorder %v446_v15, 0.0  ;;  %v504_v23 = vmul.f32 0.2, %v446_v15  ;;  %vm498_vm8 = vcmp.ge.f32.partialorder %v487_v19, 0.0 }
 0x105   : > { %v511_v24 = vsel %vm495_vm5, %v444_v11, %v503_v18  ;;  %v506_v25 = vmul.f32 0.2, %v487_v19 }
 0x106   : > { %v513_v27 = vsel %vm497_vm6, %v485_v14, %v505_v22  ;;  %v512_v28 = vsel %vm496_vm7, %v446_v15, %v504_v23 }
 0x107   : > { %v651_v29 = vpack.c.bf16 %v512_v28, %v511_v24  ;;  %v514_v30 = vsel %vm498_vm8, %v487_v19, %v506_v25 }
 0x108   : > { %v652_v31 = vpack.c.bf16 %v514_v30, %v513_v27 }
 0x109   : > { %549 = vst [vmem:[%s752_s25 + $0x10] sm:$0xff] %v651_v29 }
 0x10a   : > { %550 = vst [vmem:[%s752_s25 + $0x18] sm:$0xff] %v652_v31 }
 0x10b PF: > { %s13_s12 = sadd.s32 1, %s670_s12  }
 0x10c   : > { %p10_p4 = scmp.ge.s32.totalorder %s13_s12, 4  }
 0x10e   :  { %12 = sbr.rel (!%p10_p4) target bundleno = 1 (0x1), region = 62 }

// kernel: discriminator_forward.5
= control target key start
LH: loop header
LB: loop body
LE: loop exit
PB: predicated region body
PF: predicated region fallthrough
CT: control target
= control target key end

     0   :  { %s600_s15 = smov 0   ;;  %s636_s0 = inlined_call_operand.vmem [shape: bf16[2,128,256], index: 0, kind: input, shape index: {}]   ;;  %s637_s1 = inlined_call_operand.vmem [shape: bf16[16,128], index: 1, kind: input, shape index: {}]   ;;  %s638_s2 = inlined_call_operand.vmem [shape: f32[16,1], index: 2, kind: input, shape index: {}]   ;;  %s639_s3 = inlined_call_operand.vmem [shape: f32[16,1], index: 3, kind: input, shape index: {}]   ;;  %s640_s4 = inlined_call_operand.vmem [shape: bf16[2,16,256], index: 4, kind: output, shape index: {}]  }
   0x1 LB: > { %s492_s16 = sadd.s32 4294967295, %s572_s15   ;;  %p496_p0 = scmp.ge.s32.totalorder %s572_s15, 1  ;;  %s572_s15 = sphi %s600_s15, %s14_s15  }
   0x2   : > { %p162_p1 = scmp.lt.s32.totalorder %s572_s15, 3 }
   0x4   : > { %p163_p2 = pnand %p496_p0, %p162_p1 }
   0x5   : > { %p188_p3 = scmp.lt.s32.totalorder (!%p163_p2), %s492_s16, 1  ;;  %v574_v0 = vmov (!%p163_p2), 0   ;;  %v561_v17 = vld [vmem:[%s637_s1] sm:$0xff] (!%p163_p2)   ;;  %v380_v18 = vld [vmem:[%s638_s2 + $0x8] sm:$0xff] (!%p163_p2) }
   0x6   : > { %166 = sbr.rel (%p163_p2) target bundleno = 587 (0x24b), region = 36  ;;  %335 = vmatprep.mubr.bf16.mxu0 (!%p163_p2), %v574_v0  ;;  %536 = vset.pattern.permute.xlu1 (!%p163_p2), %v574_v0  ;;  %v395_v19 = vld [vmem:[%s639_s3] sm:$0xff] (!%p163_p2)  ;;  %v396_v41 = vld [vmem:[%s639_s3 + $0x8] sm:$0xff] (!%p163_p2) }
   0x7   : > { %535 = vset.pattern.permute.xlu0 (!%p163_p2), %v574_v0  ;;  %388 = vperm.xlu1 (!%p163_p2), %536, %v380_v18   ;;  %v379_v26 = vld [vmem:[%s638_s2] sm:$0xff] (!%p163_p2) }
   0xb   : > { %399 = vperm.xlu1 (!%p163_p2), %536, %v395_v19  }
   0xd   : > { %s642_s16 = smov (!%p188_p3, %s492_s16), 1 }
   0xe   : > { %s522_s17 = sshll.u32 %s642_s16, 7  ;;  %s523_s5 = sshll.u32 %s642_s16, 4 }
   0xf   : > { %s192_s20 = scalar_lea.vmem %s636_s0, %s522_s17  ;;  %s197_s8 = scalar_lea.vmem %s640_s4, %s523_s5 }
  0x10   : > { %v537_v1 = vld [vmem:[%s192_s20 + $0x4] ss:$8 sps:$4 sm:$0xff]   ;;  %v539_v2 = vld [vmem:[%s192_s20] ss:$8 sps:$4 sm:$0xff]   ;;  %v540_v3 = vld [vmem:[%s192_s20 + $0x14] ss:$8 sps:$4 sm:$0xff]  }
  0x11   : > { %303 = vmatprep.subr.bf16.mxu0 %v537_v1  ;;  %v542_v4 = vld [vmem:[%s192_s20 + $0x10] ss:$8 sps:$4 sm:$0xff]   ;;  %v543_v5 = vld [vmem:[%s192_s20 + $0x24] ss:$8 sps:$4 sm:$0xff]   ;;  %v545_v6 = vld [vmem:[%s192_s20 + $0x20] ss:$8 sps:$4 sm:$0xff]  }
  0x12   : > { %304 = vmatpush1.bf16.msra.mxu0 %v539_v2  ;;  %v546_v7 = vld [vmem:[%s192_s20 + $0x34] ss:$8 sps:$4 sm:$0xff]   ;;  %v548_v8 = vld [vmem:[%s192_s20 + $0x30] ss:$8 sps:$4 sm:$0xff]   ;;  %v549_v9 = vld [vmem:[%s192_s20 + $0x44] ss:$8 sps:$4 sm:$0xff]  }
  0x13   : > { %305 = vmatprep.subr.bf16.mxu0 %v540_v3  ;;  %v551_v10 = vld [vmem:[%s192_s20 + $0x40] ss:$8 sps:$4 sm:$0xff]   ;;  %v552_v11 = vld [vmem:[%s192_s20 + $0x54] ss:$8 sps:$4 sm:$0xff]   ;;  %v554_v12 = vld [vmem:[%s192_s20 + $0x50] ss:$8 sps:$4 sm:$0xff]  }
  0x14   : > { %v555_v13 = vld [vmem:[%s192_s20 + $0x64] ss:$8 sps:$4 sm:$0xff]   ;;  %v557_v14 = vld [vmem:[%s192_s20 + $0x60] ss:$8 sps:$4 sm:$0xff]   ;;  %v558_v15 = vld [vmem:[%s192_s20 + $0x74] ss:$8 sps:$4 sm:$0xff]  }
  0x15   : > { %v560_v16 = vld [vmem:[%s192_s20 + $0x70] ss:$8 sps:$4 sm:$0xff]  }
  0x16   : > { %306 = vmatpush1.bf16.msra.mxu0 %v542_v4 }
  0x17   : > { %307 = vmatprep.subr.bf16.mxu0 %v543_v5 }
  0x1a   : > { %308 = vmatpush1.bf16.msra.mxu0 %v545_v6 }
  0x1b   : > { %309 = vmatprep.subr.bf16.mxu0 %v546_v7 }
  0x1e   : > { %310 = vmatpush1.bf16.msra.mxu0 %v548_v8 }
  0x1f   : > { %311 = vmatprep.subr.bf16.mxu0 %v549_v9 }
  0x22   : > { %312 = vmatpush1.bf16.msra.mxu0 %v551_v10 }
  0x23   : > { %313 = vmatprep.subr.bf16.mxu0 %v552_v11 }
  0x26   : > { %314 = vmatpush1.bf16.msra.mxu0 %v554_v12 }
  0x27   : > { %315 = vmatprep.subr.bf16.mxu0 %v555_v13 }
  0x2a   : > { %316 = vmatpush1.bf16.msra.mxu0 %v557_v14 }
  0x2b   : > { %317 = vmatprep.subr.bf16.mxu0 %v558_v15 }
  0x2e   : > { %318 = vmatpush1.bf16.msra.mxu0 %v560_v16 }
  0x31   : > { %336 = vmatmul.mubr.bf16.vlgmr.msra.gmra.mrb[0].mxu0 %v561_v17 }
  0x86   : > { %v389_v42 = vpop.permute.xlu1 %388 }
  0x8a   : > { %v400_v43 = vpop.permute.xlu1 %399 }
 0x104   : > { %v337_v20 = vpop.f32.mrb[0].mxu0 }
 0x105   : > { %v339_v21 = vpop.f32.mrb[1].mxu0 }
 0x106   : > { %v341_v22 = vpop.f32.mrb[2].mxu0  ;;  %v346_v23 = vadd.f32 %v339_v21, %v337_v20 }
 0x107   : > { %v343_v24 = vpop.f32.mrb[3].mxu0 }
 0x108   : > { %v349_v25 = vadd.f32 %v343_v24, %v341_v22  ;;  %347 = vadd.xlane.f32.xlu0 %v346_v23 }
 0x10c   : > { %350 = vadd.xlane.f32.xlu0 %v349_v25 }
 0x122   : > { %383 = vperm.xlu0 %535, %v379_v26  }
 0x195   : > { %v348_v27 = vpop.xlane.xlu0 %347 }
 0x196   : > { %v353_v28 = vmul.f32 0.00390625, %v348_v27 }
 0x198   : > { %v355_v29 = vsub.f32 %v337_v20, %v353_v28  ;;  %v356_v30 = vsub.f32 %v339_v21, %v353_v28 }
 0x199   : > { %v351_v31 = vpop.xlane.xlu0 %350 }
 0x19a   : > { %v354_v32 = vmul.f32 0.00390625, %v351_v31  ;;  %v359_v33 = vmul.f32 %v355_v29, %v355_v29  ;;  %v360_v34 = vmul.f32 %v356_v30, %v356_v30 }
 0x19c   : > { %v357_v35 = vsub.f32 %v341_v22, %v354_v32  ;;  %v358_v36 = vsub.f32 %v343_v24, %v354_v32  ;;  %v363_v37 = vadd.f32 %v360_v34, %v359_v33 }
 0x19e   : > { %364 = vadd.xlane.f32.xlu1 %v363_v37  ;;  %v361_v38 = vmul.f32 %v357_v35, %v357_v35  ;;  %v362_v39 = vmul.f32 %v358_v36, %v358_v36 }
 0x1a0   : > { %v366_v40 = vadd.f32 %v362_v39, %v361_v38 }
 0x1a1   : > { %v384_v51 = vpop.permute.xlu0 %383 }
 0x1a2   : > { %367 = vadd.xlane.f32.xlu1 %v366_v40 }
 0x1b3   : > { %404 = vperm.xlu1 %536, %v396_v41  }
 0x22b   : > { %v365_v44 = vpop.xlane.xlu1 %364 }
 0x22c   : > { %v369_v45 = vmul.f32 0.00390625, %v365_v44 }
 0x22e   : > { %v371_v46 = vadd.f32 1e-05, %v369_v45 }
 0x22f   : > { %v368_v47 = vpop.xlane.xlu1 %367 }
 0x230   : > { %562 = vrsqrt.f32 %v371_v46  ;;  %v370_v48 = vmul.f32 0.00390625, %v368_v47 }
 0x232   : > { %v372_v49 = vadd.f32 1e-05, %v370_v48 }
 0x233   : > { %v405_v63 = vpop.permute.xlu1 %404 }
 0x234   : > { %564 = vrsqrt.f32 %v372_v49 }
 0x23a   : > { %v563_v50 = vpop.eup %562 }
 0x23b   : > { %v375_v52 = vmul.f32 %v563_v50, %v355_v29  ;;  %v376_v53 = vmul.f32 %v563_v50, %v356_v30 }
 0x23d   : > { %v391_v54 = vmul.f32 %v384_v51, %v375_v52  ;;  %v392_v55 = vmul.f32 %v384_v51, %v376_v53 }
 0x23e   : > { %v565_v56 = vpop.eup %564 }
 0x23f   : > { %v377_v57 = vmul.f32 %v565_v56, %v357_v35  ;;  %v378_v58 = vmul.f32 %v565_v56, %v358_v36  ;;  %v407_v59 = vadd.f32 %v400_v43, %v391_v54  ;;  %v408_v60 = vadd.f32 %v400_v43, %v392_v55 }
 0x241   : > { %v393_v61 = vmul.f32 %v389_v42, %v377_v57  ;;  %v394_v62 = vmul.f32 %v389_v42, %v378_v58  ;;  %vm411_vm0 = vcmp.ge.f32.partialorder %v407_v59, 0.0  ;;  %vm412_vm1 = vcmp.ge.f32.partialorder %v408_v60, 0.0 }
 0x242   : > { %v415_v0 = vmul.f32 0.2, %v407_v59  ;;  %v416_v1 = vmul.f32 0.2, %v408_v60 }
 0x243   : > { %v409_v2 = vadd.f32 %v405_v63, %v393_v61  ;;  %v410_v3 = vadd.f32 %v405_v63, %v394_v62 }
 0x244   : > { %v419_v4 = vsel %vm411_vm0, %v407_v59, %v415_v0  ;;  %v420_v5 = vsel %vm412_vm1, %v408_v60, %v416_v1 }
 0x245   : > { %vm413_vm2 = vcmp.ge.f32.partialorder %v409_v2, 0.0  ;;  %vm414_vm3 = vcmp.ge.f32.partialorder %v410_v3, 0.0  ;;  %v417_v6 = vmul.f32 0.2, %v409_v2  ;;  %v418_v7 = vmul.f32 0.2, %v410_v3 }
 0x246   : > { %v524_v8 = vpack.c.bf16 %v420_v5, %v419_v4 }
 0x247   : > { %v421_v9 = vsel %vm413_vm2, %v409_v2, %v417_v6  ;;  %v422_v10 = vsel %vm414_vm3, %v410_v3, %v418_v7 }
 0x248   : > { %v525_v11 = vpack.c.bf16 %v422_v10, %v421_v9  ;;  %435 = vst [vmem:[%s197_s8] sm:$0xff] %v524_v8 }
 0x24a   : > { %436 = vst [vmem:[%s197_s8 + $0x8] sm:$0xff] %v525_v11 }
 0x24b PF: > { %s14_s15 = sadd.s32 1, %s572_s15  }
 0x24c   : > { %p11_p4 = scmp.ge.s32.totalorder %s14_s15, 4  }
 0x24e   :  { %13 = sbr.rel (!%p11_p4) target bundleno = 1 (0x1), region = 66 }

// kernel: discriminator_forward.6
= control target key start
LH: loop header
LB: loop body
LE: loop exit
PB: predicated region body
PF: predicated region fallthrough
CT: control target
= control target key end

     0   :  { %s758_s15 = smov 0   ;;  %s845_s0 = inlined_call_operand.vmem [shape: bf16[2,256,64], index: 0, kind: input, shape index: {}]   ;;  %s846_s1 = inlined_call_operand.vmem [shape: bf16[32,256], index: 1, kind: input, shape index: {}]   ;;  %s847_s2 = inlined_call_operand.vmem [shape: f32[32,1], index: 2, kind: input, shape index: {}]   ;;  %s848_s3 = inlined_call_operand.vmem [shape: f32[32,1], index: 3, kind: input, shape index: {}]   ;;  %s849_s4 = inlined_call_operand.vmem [shape: bf16[2,32,64], index: 4, kind: output, shape index: {}]  }
   0x1 LB: > { %s598_s16 = sadd.s32 4294967295, %s730_s15   ;;  %p602_p0 = scmp.ge.s32.totalorder %s730_s15, 1  ;;  %s730_s15 = sphi %s758_s15, %s14_s15  }
   0x2   : > { %p162_p1 = scmp.lt.s32.totalorder %s730_s15, 3 }
   0x4   : > { %p163_p2 = pnand %p602_p0, %p162_p1 }
   0x5   : > { %p188_p3 = scmp.lt.s32.totalorder (!%p163_p2), %s598_s16, 1  ;;  %v712_v0 = vld [vmem:[%s846_s1 + $0x4] ss:$8 sps:$4 sm:$0xff] (!%p163_p2)   ;;  %v715_v1 = vld [vmem:[%s846_s1 + $0x14] ss:$8 sps:$4 sm:$0xff] (!%p163_p2)   ;;  %v732_v20 = vmov (!%p163_p2), 0  }
   0x6   : > { %166 = sbr.rel (%p163_p2) target bundleno = 591 (0x24f), region = 36  ;;  %383 = vmatprep.mubr.bf16.mxu0 (!%p163_p2), %v712_v0  ;;  %391 = vmatprep.mubr.bf16.mxu1 (!%p163_p2), %v715_v1  ;;  %v710_v18 = vld [vmem:[%s846_s1] ss:$8 sps:$4 sm:$0xff] (!%p163_p2)   ;;  %v713_v19 = vld [vmem:[%s846_s1 + $0x10] ss:$8 sps:$4 sm:$0xff] (!%p163_p2)   ;;  %vm400_vm0 = vcmask (!%p163_p2), 523264  }
   0x7   : > { %693 = vset.pattern.permute.xlu1 (!%p163_p2), %v732_v20  ;;  %692 = vset.pattern.permute.xlu0 (!%p163_p2), %v732_v20  ;;  %v455_v37 = vld [vmem:[%s847_s2 + $0x8] sm:$0xff] (!%p163_p2)  ;;  %v456_v38 = vld [vmem:[%s847_s2 + $0x10] sm:$0xff] (!%p163_p2)  ;;  %v457_v39 = vld [vmem:[%s847_s2 + $0x18] sm:$0xff] (!%p163_p2)  ;;  %vm538_vm2 = vcmask (!%p163_p2), 519168  }
   0x8   : > { %v482_v40 = vld [vmem:[%s848_s3] sm:$0xff] (!%p163_p2)  ;;  %v483_v41 = vld [vmem:[%s848_s3 + $0x8] sm:$0xff] (!%p163_p2)  ;;  %v484_v42 = vld [vmem:[%s848_s3 + $0x10] sm:$0xff] (!%p163_p2) }
   0x9   : > { %v485_v63 = vld [vmem:[%s848_s3 + $0x18] sm:$0xff] (!%p163_p2)  ;;  %v454_v0 = vld [vmem:[%s847_s2] sm:$0xff] (!%p163_p2) }
   0xd   : > { %s851_s16 = smov (!%p188_p3, %s598_s16), 1 }
   0xe   : > { %s633_s21 = sshll.u32 %s851_s16, 7 }
   0xf   : > { %s778_s24 = scalar_lea.vmem %s845_s0, %s633_s21  ;;  %s634_s21 = sshll.u32 %s851_s16, 4 }
  0x10   : > { %v694_v2 = vld [vmem:[%s778_s24 + $0x40] sm:$0xff]   ;;  %v696_v4 = vld [vmem:[%s778_s24 + $0x48] sm:$0xff]   ;;  %v698_v6 = vld [vmem:[%s778_s24 + $0x50] sm:$0xff]  }
  0x11   : > { %v695_v3 = vld [vmem:[%s778_s24] sm:$0xff]   ;;  %639 = vmatprep.subr.bf16.mxu0 %v694_v2  ;;  %667 = vmatprep.subr.bf16.mxu1 %v694_v2  ;;  %v697_v5 = vld [vmem:[%s778_s24 + $0x8] sm:$0xff]   ;;  %v699_v7 = vld [vmem:[%s778_s24 + $0x10] sm:$0xff]  }
  0x12   : > { %640 = vmatpush3.bf16.msra.mxu0 %v695_v3  ;;  %675 = vmatpush3.bf16.msra.mxu1 %v695_v3  ;;  %v700_v8 = vld [vmem:[%s778_s24 + $0x58] sm:$0xff]   ;;  %v702_v10 = vld [vmem:[%s778_s24 + $0x60] sm:$0xff]   ;;  %v704_v12 = vld [vmem:[%s778_s24 + $0x68] sm:$0xff]  }
  0x13   : > { %641 = vmatprep.subr.bf16.mxu0 %v696_v4  ;;  %668 = vmatprep.subr.bf16.mxu1 %v696_v4  ;;  %v701_v9 = vld [vmem:[%s778_s24 + $0x18] sm:$0xff]   ;;  %v703_v11 = vld [vmem:[%s778_s24 + $0x20] sm:$0xff]   ;;  %v705_v13 = vld [vmem:[%s778_s24 + $0x28] sm:$0xff]  }
  0x14   : > { %v706_v14 = vld [vmem:[%s778_s24 + $0x70] sm:$0xff]   ;;  %v708_v16 = vld [vmem:[%s778_s24 + $0x78] sm:$0xff]  }
  0x15   : > { %v707_v15 = vld [vmem:[%s778_s24 + $0x30] sm:$0xff]   ;;  %v709_v17 = vld [vmem:[%s778_s24 + $0x38] sm:$0xff]   ;;  %s197_s24 = scalar_lea.vmem %s849_s4, %s634_s21 }
  0x16   : > { %642 = vmatpush3.bf16.msra.mxu0 %v697_v5  ;;  %676 = vmatpush3.bf16.msra.mxu1 %v697_v5 }
  0x17   : > { %643 = vmatprep.subr.bf16.mxu0 %v698_v6  ;;  %669 = vmatprep.subr.bf16.mxu1 %v698_v6 }
  0x1a   : > { %644 = vmatpush3.bf16.msra.mxu0 %v699_v7  ;;  %677 = vmatpush3.bf16.msra.mxu1 %v699_v7 }
  0x1b   : > { %645 = vmatprep.subr.bf16.mxu0 %v700_v8  ;;  %670 = vmatprep.subr.bf16.mxu1 %v700_v8 }
  0x1e   : > { %646 = vmatpush3.bf16.msra.mxu0 %v701_v9  ;;  %678 = vmatpush3.bf16.msra.mxu1 %v701_v9 }
  0x1f   : > { %647 = vmatprep.subr.bf16.mxu0 %v702_v10  ;;  %671 = vmatprep.subr.bf16.mxu1 %v702_v10 }
  0x22   : > { %648 = vmatpush3.bf16.msra.mxu0 %v703_v11  ;;  %679 = vmatpush3.bf16.msra.mxu1 %v703_v11 }
  0x23   : > { %649 = vmatprep.subr.bf16.mxu0 %v704_v12  ;;  %672 = vmatprep.subr.bf16.mxu1 %v704_v12 }
  0x26   : > { %650 = vmatpush3.bf16.msra.mxu0 %v705_v13  ;;  %680 = vmatpush3.bf16.msra.mxu1 %v705_v13 }
  0x27   : > { %651 = vmatprep.subr.bf16.mxu0 %v706_v14  ;;  %673 = vmatprep.subr.bf16.mxu1 %v706_v14 }
  0x2a   : > { %652 = vmatpush3.bf16.msra.mxu0 %v707_v15  ;;  %681 = vmatpush3.bf16.msra.mxu1 %v707_v15 }
  0x2b   : > { %653 = vmatprep.subr.bf16.mxu0 %v708_v16  ;;  %674 = vmatprep.subr.bf16.mxu1 %v708_v16 }
  0x2e   : > { %654 = vmatpush3.bf16.msra.mxu0 %v709_v17  ;;  %682 = vmatpush3.bf16.msra.mxu1 %v709_v17 }
  0x31   : > { %384 = vmatmul.mubr.bf16.vlgmr.msra.gmra.mrb[0].mxu0 %v710_v18  ;;  %392 = vmatmul.mubr.bf16.vlgmr.msra.gmra.mrb[0].mxu1 %v713_v19 }
 0x104   : > { %v655_v21 = vpop.f32.mrb[0].mxu0  ;;  %v661_v22 = vpop.f32.mrb[0].mxu1 }
 0x105   : > { %v656_v23 = vpop.f32.mrb[1].mxu0  ;;  %v662_v24 = vpop.f32.mrb[1].mxu1 }
 0x106   : > { %v657_v25 = vadd.f32 %v656_v23, %v655_v21  ;;  %v663_v26 = vadd.f32 %v662_v24, %v661_v22  ;;  %v658_v27 = vpop.f32.mrb[2].mxu0  ;;  %v664_v28 = vpop.f32.mrb[2].mxu1 }
 0x107   : > { %v659_v29 = vpop.f32.mrb[3].mxu0  ;;  %v665_v30 = vpop.f32.mrb[3].mxu1 }
 0x108   : > { %v660_v31 = vadd.f32 %v659_v29, %v658_v27  ;;  %v666_v32 = vadd.f32 %v665_v30, %v664_v28  ;;  %v407_v33 = vsel %vm400_vm0, %v663_v26, 0.0  ;;  %v401_v34 = vsel %vm400_vm0, %v657_v25, 0.0 }
 0x109   : > { %408 = vadd.xlane.f32.xlu1 %v407_v33  ;;  %402 = vadd.xlane.f32.xlu0 %v401_v34 }
 0x10a   : > { %v410_v35 = vsel %vm400_vm0, %v666_v32, 0.0  ;;  %v404_v36 = vsel %vm400_vm0, %v660_v31, 0.0 }
 0x10d   : > { %411 = vadd.xlane.f32.xlu1 %v410_v35  ;;  %405 = vadd.xlane.f32.xlu0 %v404_v36 }
 0x11e   : > { %465 = vperm.xlu1 %693, %v455_v37  }
 0x122   : > { %470 = vperm.xlu1 %693, %v456_v38  }
 0x126   : > { %475 = vperm.xlu1 %693, %v457_v39  }
 0x12a   : > { %488 = vperm.xlu1 %693, %v482_v40  }
 0x12e   : > { %493 = vperm.xlu1 %693, %v483_v41  }
 0x132   : > { %498 = vperm.xlu1 %693, %v484_v42  }
 0x196   : > { %v409_v43 = vpop.xlane.xlu1 %408  ;;  %v403_v44 = vpop.xlane.xlu0 %402 }
 0x197   : > { %v416_v45 = vmul.f32 0.015625, %v409_v43  ;;  %v414_v46 = vmul.f32 0.015625, %v403_v44 }
 0x199   : > { %v420_v47 = vsub.f32 %v663_v26, %v416_v45  ;;  %v418_v48 = vsub.f32 %v657_v25, %v414_v46 }
 0x19a   : > { %v412_v49 = vpop.xlane.xlu1 %411  ;;  %v406_v50 = vpop.xlane.xlu0 %405 }
 0x19b   : > { %v417_v51 = vmul.f32 0.015625, %v412_v49  ;;  %v415_v52 = vmul.f32 0.015625, %v406_v50  ;;  %v422_v53 = vmul.f32 %v418_v48, %v418_v48  ;;  %v424_v57 = vmul.f32 %v420_v47, %v420_v47 }
 0x19d   : > { %v421_v54 = vsub.f32 %v666_v32, %v417_v51  ;;  %v419_v55 = vsub.f32 %v660_v31, %v415_v52  ;;  %v426_v56 = vsel %vm400_vm0, %v422_v53, 0.0  ;;  %v432_v59 = vsel %vm400_vm0, %v424_v57, 0.0 }
 0x19e   : > { %427 = vadd.xlane.f32.xlu0 %v426_v56  ;;  %v466_v1 = vpop.permute.xlu1 %465 }
 0x19f   : > { %v423_v58 = vmul.f32 %v419_v55, %v419_v55  ;;  %v425_v61 = vmul.f32 %v421_v54, %v421_v54 }
 0x1a1   : > { %v429_v60 = vsel %vm400_vm0, %v423_v58, 0.0  ;;  %v435_v62 = vsel %vm400_vm0, %v425_v61, 0.0 }
 0x1a2   : > { %433 = vadd.xlane.f32.xlu0 %v432_v59  ;;  %430 = vadd.xlane.f32.xlu1 %v429_v60  ;;  %v471_v2 = vpop.permute.xlu1 %470 }
 0x1a6   : > { %436 = vadd.xlane.f32.xlu1 %v435_v62  ;;  %v476_v3 = vpop.permute.xlu1 %475 }
 0x1aa   : > { %v489_v4 = vpop.permute.xlu1 %488 }
 0x1ae   : > { %v494_v5 = vpop.permute.xlu1 %493 }
 0x1b2   : > { %v499_v6 = vpop.permute.xlu1 %498 }
 0x1b7   : > { %503 = vperm.xlu1 %693, %v485_v63  }
 0x1b8   : > { %460 = vperm.xlu0 %692, %v454_v0  }
 0x22b   : > { %v428_v7 = vpop.xlane.xlu0 %427 }
 0x22c   : > { %v438_v8 = vmul.f32 0.015625, %v428_v7 }
 0x22e   : > { %v442_v9 = vadd.f32 1e-05, %v438_v8 }
 0x22f   : > { %v431_v10 = vpop.xlane.xlu1 %430  ;;  %v434_v11 = vpop.xlane.xlu0 %433 }
 0x230   : > { %716 = vrsqrt.f32 %v442_v9  ;;  %v439_v12 = vmul.f32 0.015625, %v431_v10  ;;  %v440_v13 = vmul.f32 0.015625, %v434_v11 }
 0x232   : > { %v443_v14 = vadd.f32 1e-05, %v439_v12  ;;  %v444_v15 = vadd.f32 1e-05, %v440_v13 }
 0x233   : > { %v437_v16 = vpop.xlane.xlu1 %436 }
 0x234   : > { %718 = vrsqrt.f32 %v443_v14  ;;  %v441_v17 = vmul.f32 0.015625, %v437_v16 }
 0x235   : > { %720 = vrsqrt.f32 %v444_v15 }
 0x236   : > { %v445_v18 = vadd.f32 1e-05, %v441_v17 }
 0x237   : > { %v461_v20 = vpop.permute.xlu0 %460  ;;  %v504_v40 = vpop.permute.xlu1 %503 }
 0x238   : > { %722 = vrsqrt.f32 %v445_v18 }
 0x23a   : > { %v717_v19 = vpop.eup %716 }
 0x23b   : > { %v450_v21 = vmul.f32 %v717_v19, %v418_v48 }
 0x23d   : > { %v478_v22 = vmul.f32 %v461_v20, %v450_v21 }
 0x23e   : > { %v719_v23 = vpop.eup %718 }
 0x23f   : > { %v721_v24 = vpop.eup %720  ;;  %v451_v25 = vmul.f32 %v719_v23, %v419_v55  ;;  %v506_v26 = vadd.f32 %v489_v4, %v478_v22 }
 0x240   : > { %v452_v27 = vmul.f32 %v721_v24, %v420_v47 }
 0x241   : > { %v479_v28 = vmul.f32 %v466_v1, %v451_v25  ;;  %vm510_vm1 = vcmp.ge.f32.partialorder %v506_v26, 0.0  ;;  %v514_v29 = vmul.f32 0.2, %v506_v26 }
 0x242   : > { %v723_v30 = vpop.eup %722  ;;  %v480_v31 = vmul.f32 %v471_v2, %v452_v27 }
 0x243   : > { %v507_v32 = vadd.f32 %v494_v5, %v479_v28  ;;  %v453_v33 = vmul.f32 %v723_v30, %v421_v54  ;;  %v518_v34 = vsel %vm510_vm1, %v506_v26, %v514_v29 }
 0x244   : > { %v508_v35 = vadd.f32 %v499_v6, %v480_v31  ;;  %v635_v36 = vpack.c.bf16 %v518_v34, %v518_v34 }
 0x245   : > { %vm511_vm3 = vcmp.ge.f32.partialorder %v507_v32, 0.0  ;;  %v515_v37 = vmul.f32 0.2, %v507_v32  ;;  %v481_v38 = vmul.f32 %v476_v3, %v453_v33 }
 0x246   : > { %vm512_vm4 = vcmp.ge.f32.partialorder %v508_v35, 0.0  ;;  %v516_v39 = vmul.f32 0.2, %v508_v35  ;;  %539 = vst.msk [vmem:[%s197_s24] sm:$0xf] %vm538_vm2, %v635_v36 }
 0x247   : > { %v519_v41 = vsel %vm511_vm3, %v507_v32, %v515_v37  ;;  %v509_v42 = vadd.f32 %v504_v40, %v481_v38 }
 0x248   : > { %v636_v43 = vpack.c.bf16 %v519_v41, %v519_v41  ;;  %v520_v44 = vsel %vm512_vm4, %v508_v35, %v516_v39 }
 0x249   : > { %v637_v45 = vpack.c.bf16 %v520_v44, %v520_v44  ;;  %vm513_vm5 = vcmp.ge.f32.partialorder %v509_v42, 0.0  ;;  %v517_v46 = vmul.f32 0.2, %v509_v42 }
 0x24a   : > { %540 = vst.msk [vmem:[%s197_s24 + $0x4] sm:$0xf] %vm538_vm2, %v636_v43 }
 0x24b   : > { %v521_v47 = vsel %vm513_vm5, %v509_v42, %v517_v46  ;;  %541 = vst.msk [vmem:[%s197_s24 + $0x8] sm:$0xf] %vm538_vm2, %v637_v45 }
 0x24c   : > { %v638_v48 = vpack.c.bf16 %v521_v47, %v521_v47 }
 0x24e   : > { %542 = vst.msk [vmem:[%s197_s24 + $0xc] sm:$0xf] %vm538_vm2, %v638_v48 }
 0x24f PF: > { %s14_s15 = sadd.s32 1, %s730_s15  }
 0x250   : > { %p11_p4 = scmp.ge.s32.totalorder %s14_s15, 4  }
 0x252   :  { %13 = sbr.rel (!%p11_p4) target bundleno = 1 (0x1), region = 66 }

// kernel: discriminator_forward.7
= control target key start
LH: loop header
LB: loop body
LE: loop exit
PB: predicated region body
PF: predicated region fallthrough
CT: control target
= control target key end

     0   :  { %s1337_s23 = smov 0   ;;  %s1632_s0 = inlined_call_operand.vmem [shape: bf16[2,512,16], index: 0, kind: input, shape index: {}]   ;;  %s1633_s1 = inlined_call_operand.vmem [shape: bf16[64,512], index: 1, kind: input, shape index: {}]   ;;  %s1634_s2 = inlined_call_operand.vmem [shape: f32[64,1], index: 2, kind: input, shape index: {}]   ;;  %s1635_s3 = inlined_call_operand.vmem [shape: f32[64,1], index: 3, kind: input, shape index: {}]   ;;  %s1636_s4 = inlined_call_operand.vmem [shape: f32[64,16], index: 4, kind: input, shape index: {}]   ;;  %s1637_s5 = inlined_call_operand.<no memory space> [shape: f32[1,1], index: 5, kind: input, shape index: {}]   ;;  %s1638_s6 = inlined_call_operand.vmem [shape: f32[2,1,1], index: 6, kind: output, shape index: {}]  }
   0x1   :  { %v11_v0 = vstv %s1637_s5 }
   0x2   :  { %12 = vst [vmem:[#allocation2] sm:$0x1] %v11_v0 }
   0x3 LB: > { %s1067_s24 = sadd.s32 4294967295, %s1296_s23   ;;  %p1071_p0 = scmp.ge.s32.totalorder %s1296_s23, 1  ;;  %s1296_s23 = sphi %s1337_s23, %s18_s23  }
   0x4   : > { %p214_p1 = scmp.lt.s32.totalorder %s1296_s23, 3 }
   0x6   : > { %p215_p2 = pnand %p1071_p0, %p214_p1 }
   0x7   : > { %p242_p3 = scmp.lt.s32.totalorder (!%p215_p2), %s1067_s24, 1  ;;  %v1252_v1 = vld [vmem:[%s1633_s1 + $0x4] ss:$16 sps:$4 sm:$0xff] (!%p215_p2)   ;;  %v1255_v2 = vld [vmem:[%s1633_s1 + $0xc] ss:$16 sps:$4 sm:$0xff] (!%p215_p2)   ;;  %v1298_v49 = vmov (!%p215_p2), 0  }
   0x8   : > { %218 = sbr.rel (%p215_p2) target bundleno = 898 (0x382), region = 44  ;;  %635 = vmatprep.mubr.bf16.mxu0 (!%p215_p2), %v1252_v1  ;;  %700 = vmatprep.mubr.bf16.mxu1 (!%p215_p2), %v1255_v2  ;;  %v1250_v33 = vld [vmem:[%s1633_s1] ss:$16 sps:$4 sm:$0xff] (!%p215_p2)   ;;  %v1253_v35 = vld [vmem:[%s1633_s1 + $0x8] ss:$16 sps:$4 sm:$0xff] (!%p215_p2)   ;;  %vm733_vm0 = vcmask (!%p215_p2), 130048  }
   0x9   : > { %v1256_v37 = vld [vmem:[%s1633_s1 + $0x24] ss:$16 sps:$4 sm:$0xff] (!%p215_p2)   ;;  %v1258_v38 = vld [vmem:[%s1633_s1 + $0x2c] ss:$16 sps:$4 sm:$0xff] (!%p215_p2)   ;;  %v1260_v39 = vld [vmem:[%s1633_s1 + $0x20] ss:$16 sps:$4 sm:$0xff] (!%p215_p2)   ;;  %1217 = vset.pattern.permute.xlu1 (!%p215_p2), %v1298_v49  ;;  %1216 = vset.pattern.permute.xlu0 (!%p215_p2), %v1298_v49 }
   0xa   : > { %v1261_v40 = vld [vmem:[%s1633_s1 + $0x28] ss:$16 sps:$4 sm:$0xff] (!%p215_p2)   ;;  %v1262_v41 = vld [vmem:[%s1633_s1 + $0x44] ss:$16 sps:$4 sm:$0xff] (!%p215_p2)   ;;  %v1264_v42 = vld [vmem:[%s1633_s1 + $0x4c] ss:$16 sps:$4 sm:$0xff] (!%p215_p2)  }
   0xb   : > { %v1266_v43 = vld [vmem:[%s1633_s1 + $0x40] ss:$16 sps:$4 sm:$0xff] (!%p215_p2)   ;;  %v1267_v44 = vld [vmem:[%s1633_s1 + $0x48] ss:$16 sps:$4 sm:$0xff] (!%p215_p2)   ;;  %v1268_v45 = vld [vmem:[%s1633_s1 + $0x64] ss:$16 sps:$4 sm:$0xff] (!%p215_p2)  }
   0xc   : > { %v1270_v46 = vld [vmem:[%s1633_s1 + $0x6c] ss:$16 sps:$4 sm:$0xff] (!%p215_p2)   ;;  %v1272_v47 = vld [vmem:[%s1633_s1 + $0x60] ss:$16 sps:$4 sm:$0xff] (!%p215_p2)   ;;  %v1273_v48 = vld [vmem:[%s1633_s1 + $0x68] ss:$16 sps:$4 sm:$0xff] (!%p215_p2)  }
   0xd   : > { %v840_v49 = vld [vmem:[%s1634_s2 + $0x8] sm:$0xff] (!%p215_p2)  ;;  %vm1018_vm9 = vcmask (!%p215_p2), 0  }
   0xf   : > { %s1640_s24 = smov (!%p242_p3, %s1067_s24), 1 }
  0x10   : > { %s1124_s28 = sshll.u32 %s1640_s24, 8  ;;  %s249_s18 = scalar_lea.vmem %s1638_s6, %s1640_s24 }
  0x11   : > { %s1357_s7 = scalar_lea.vmem %s1632_s0, %s1124_s28 }
  0x12   : > { %v1218_v3 = vld [vmem:[%s1357_s7 + $0x40] sm:$0xff]   ;;  %v1222_v7 = vld [vmem:[%s1357_s7 + $0x48] sm:$0xff]   ;;  %v1226_v11 = vld [vmem:[%s1357_s7 + $0x50] sm:$0xff]  }
  0x13   : > { %v1219_v4 = vld [vmem:[%s1357_s7 + $0xc0] sm:$0xff]   ;;  %1125 = vmatprep.subr.bf16.mxu0 %v1218_v3  ;;  %v1223_v8 = vld [vmem:[%s1357_s7 + $0xc8] sm:$0xff]   ;;  %v1227_v12 = vld [vmem:[%s1357_s7 + $0xd0] sm:$0xff]  }
  0x14   : > { %v1220_v5 = vld [vmem:[%s1357_s7] sm:$0xff]   ;;  %1165 = vmatprep.subr.bf16.mxu1 %v1219_v4  ;;  %v1224_v9 = vld [vmem:[%s1357_s7 + $0x8] sm:$0xff]   ;;  %v1228_v13 = vld [vmem:[%s1357_s7 + $0x10] sm:$0xff]  }
  0x15   : > { %v1221_v6 = vld [vmem:[%s1357_s7 + $0x80] sm:$0xff]   ;;  %1126 = vmatpush3.bf16.msra.mxu0 %v1220_v5  ;;  %v1225_v10 = vld [vmem:[%s1357_s7 + $0x88] sm:$0xff]   ;;  %v1229_v14 = vld [vmem:[%s1357_s7 + $0x90] sm:$0xff]  }
  0x16   : > { %1166 = vmatpush3.bf16.msra.mxu1 %v1221_v6  ;;  %1127 = vmatprep.subr.bf16.mxu0 %v1222_v7  ;;  %v1230_v15 = vld [vmem:[%s1357_s7 + $0x58] sm:$0xff]   ;;  %v1234_v19 = vld [vmem:[%s1357_s7 + $0x60] sm:$0xff]   ;;  %v1238_v23 = vld [vmem:[%s1357_s7 + $0x68] sm:$0xff]  }
  0x17   : > { %1167 = vmatprep.subr.bf16.mxu1 %v1223_v8  ;;  %v1231_v16 = vld [vmem:[%s1357_s7 + $0xd8] sm:$0xff]   ;;  %v1235_v20 = vld [vmem:[%s1357_s7 + $0xe0] sm:$0xff]   ;;  %v1239_v24 = vld [vmem:[%s1357_s7 + $0xe8] sm:$0xff]  }
  0x18   : > { %v1232_v17 = vld [vmem:[%s1357_s7 + $0x18] sm:$0xff]   ;;  %v1236_v21 = vld [vmem:[%s1357_s7 + $0x20] sm:$0xff]   ;;  %v1240_v25 = vld [vmem:[%s1357_s7 + $0x28] sm:$0xff]  }
  0x19   : > { %1128 = vmatpush3.bf16.msra.mxu0 %v1224_v9  ;;  %v1233_v18 = vld [vmem:[%s1357_s7 + $0x98] sm:$0xff]   ;;  %v1237_v22 = vld [vmem:[%s1357_s7 + $0xa0] sm:$0xff]   ;;  %v1241_v26 = vld [vmem:[%s1357_s7 + $0xa8] sm:$0xff]  }
  0x1a   : > { %1168 = vmatpush3.bf16.msra.mxu1 %v1225_v10  ;;  %1129 = vmatprep.subr.bf16.mxu0 %v1226_v11  ;;  %v1242_v27 = vld [vmem:[%s1357_s7 + $0x70] sm:$0xff]   ;;  %v1246_v31 = vld [vmem:[%s1357_s7 + $0x78] sm:$0xff]  }
  0x1b   : > { %1169 = vmatprep.subr.bf16.mxu1 %v1227_v12  ;;  %v1243_v28 = vld [vmem:[%s1357_s7 + $0xf0] sm:$0xff]   ;;  %v1247_v32 = vld [vmem:[%s1357_s7 + $0xf8] sm:$0xff]  }
  0x1c   : > { %v1244_v29 = vld [vmem:[%s1357_s7 + $0x30] sm:$0xff]   ;;  %v1248_v34 = vld [vmem:[%s1357_s7 + $0x38] sm:$0xff]  }
  0x1d   : > { %1130 = vmatpush3.bf16.msra.mxu0 %v1228_v13  ;;  %v1245_v30 = vld [vmem:[%s1357_s7 + $0xb0] sm:$0xff]   ;;  %v1249_v36 = vld [vmem:[%s1357_s7 + $0xb8] sm:$0xff]  }
  0x1e   : > { %1170 = vmatpush3.bf16.msra.mxu1 %v1229_v14  ;;  %1131 = vmatprep.subr.bf16.mxu0 %v1230_v15 }
  0x1f   : > { %1171 = vmatprep.subr.bf16.mxu1 %v1231_v16 }
  0x21   : > { %1132 = vmatpush3.bf16.msra.mxu0 %v1232_v17 }
  0x22   : > { %1172 = vmatpush3.bf16.msra.mxu1 %v1233_v18  ;;  %1133 = vmatprep.subr.bf16.mxu0 %v1234_v19 }
  0x23   : > { %1173 = vmatprep.subr.bf16.mxu1 %v1235_v20 }
  0x25   : > { %1134 = vmatpush3.bf16.msra.mxu0 %v1236_v21 }
  0x26   : > { %1174 = vmatpush3.bf16.msra.mxu1 %v1237_v22  ;;  %1135 = vmatprep.subr.bf16.mxu0 %v1238_v23 }
  0x27   : > { %1175 = vmatprep.subr.bf16.mxu1 %v1239_v24 }
  0x29   : > { %1136 = vmatpush3.bf16.msra.mxu0 %v1240_v25 }
  0x2a   : > { %1176 = vmatpush3.bf16.msra.mxu1 %v1241_v26  ;;  %1137 = vmatprep.subr.bf16.mxu0 %v1242_v27 }
  0x2b   : > { %1177 = vmatprep.subr.bf16.mxu1 %v1243_v28 }
  0x2d   : > { %1138 = vmatpush3.bf16.msra.mxu0 %v1244_v29 }
  0x2e   : > { %1178 = vmatpush3.bf16.msra.mxu1 %v1245_v30  ;;  %1139 = vmatprep.subr.bf16.mxu0 %v1246_v31 }
  0x2f   : > { %1179 = vmatprep.subr.bf16.mxu1 %v1247_v32 }
  0x31   : > { %1140 = vmatpush3.bf16.msra.mxu0 %v1248_v34 }
  0x32   : > { %1180 = vmatpush3.bf16.msra.mxu1 %v1249_v36 }
  0x34   : > { %636 = vmatmul.mubr.bf16.vlgmr.msra.gmra.mrb[0].mxu0 %v1250_v33 }
  0x35   : > { %701 = vmatmul.mubr.bf16.vlgmr.msra.gmra.mrb[0].mxu1 %v1253_v35  ;;  %643 = vmatprep.mubr.bf16.mxu0 %v1256_v37 }
  0x36   : > { %708 = vmatprep.mubr.bf16.mxu1 %v1258_v38 }
  0x3c   : > { %644 = vmatmul.mubr.bf16.gmra.mrb[4].mxu0 %v1260_v39 }
  0x3d   : > { %709 = vmatmul.mubr.bf16.gmra.mrb[4].mxu1 %v1261_v40  ;;  %651 = vmatprep.mubr.bf16.mxu0 %v1262_v41 }
  0x3e   : > { %716 = vmatprep.mubr.bf16.mxu1 %v1264_v42 }
  0x44   : > { %652 = vmatmul.mubr.bf16.gmra.mrb[8].mxu0 %v1266_v43 }
  0x45   : > { %717 = vmatmul.mubr.bf16.gmra.mrb[8].mxu1 %v1267_v44  ;;  %659 = vmatprep.mubr.bf16.mxu0 %v1268_v45 }
  0x46   : > { %724 = vmatprep.mubr.bf16.mxu1 %v1270_v46 }
  0x4c   : > { %660 = vmatmul.mubr.bf16.gmra.mrb[12].mxu0 %v1272_v47 }
  0x4d   : > { %725 = vmatmul.mubr.bf16.gmra.mrb[12].mxu1 %v1273_v48 }
 0x107   : > { %v1141_v50 = vpop.f32.mrb[0].mxu0 }
 0x108   : > { %v1181_v51 = vpop.f32.mrb[0].mxu1  ;;  %v1142_v52 = vpop.f32.mrb[1].mxu0 }
 0x109   : > { %v1143_v53 = vadd.f32 %v1142_v52, %v1141_v50  ;;  %v1182_v54 = vpop.f32.mrb[1].mxu1  ;;  %v1144_v55 = vpop.f32.mrb[2].mxu0  ;;  %v841_v50 = vld [vmem:[%s1634_s2 + $0x10] sm:$0xff]  ;;  %v839_v52 = vld [vmem:[%s1634_s2] sm:$0xff] }
 0x10a   : > { %v1183_v56 = vadd.f32 %v1182_v54, %v1181_v51  ;;  %v1184_v57 = vpop.f32.mrb[2].mxu1  ;;  %v1145_v58 = vpop.f32.mrb[3].mxu0  ;;  %v895_v51 = vld [vmem:[%s1635_s3] sm:$0xff]  ;;  %v844_v54 = vld [vmem:[%s1634_s2 + $0x28] sm:$0xff] }
 0x10b   : > { %v1146_v59 = vadd.f32 %v1145_v58, %v1144_v55  ;;  %v1185_v60 = vpop.f32.mrb[3].mxu1  ;;  %v842_v55 = vld [vmem:[%s1634_s2 + $0x18] sm:$0xff] }
 0x10c   : > { %v1186_v61 = vadd.f32 %v1185_v60, %v1184_v57  ;;  %v1433_v62 = vadd.f32 %v1183_v56, %v1143_v53  ;;  %v896_v53 = vld [vmem:[%s1635_s3 + $0x8] sm:$0xff]  ;;  %v845_v56 = vld [vmem:[%s1634_s2 + $0x30] sm:$0xff]  ;;  %v846_v58 = vld [vmem:[%s1634_s2 + $0x38] sm:$0xff] }
 0x10d   : > { %v897_v57 = vld [vmem:[%s1635_s3 + $0x10] sm:$0xff]  ;;  %v898_v60 = vld [vmem:[%s1635_s3 + $0x18] sm:$0xff] }
 0x10e   : > { %v734_v63 = vsel %vm733_vm0, %v1433_v62, 0.0  ;;  %v1437_v0 = vadd.f32 %v1186_v61, %v1146_v59  ;;  %v843_v59 = vld [vmem:[%s1634_s2 + $0x20] sm:$0xff] }
 0x10f   : > { %735 = vadd.xlane.f32.xlu0 %v734_v63  ;;  %v1147_v1 = vpop.f32.mrb[4].mxu0  ;;  %v899_v63 = vld [vmem:[%s1635_s3 + $0x20] sm:$0xff] }
 0x110   : > { %v1187_v2 = vpop.f32.mrb[4].mxu1  ;;  %v1148_v3 = vpop.f32.mrb[5].mxu0  ;;  %v737_v10 = vsel %vm733_vm0, %v1437_v0, 0.0 }
 0x111   : > { %v1149_v4 = vadd.f32 %v1148_v3, %v1147_v1  ;;  %v1188_v5 = vpop.f32.mrb[5].mxu1  ;;  %v1150_v6 = vpop.f32.mrb[6].mxu0  ;;  %v900_v1 = vld [vmem:[%s1635_s3 + $0x28] sm:$0xff] }
 0x112   : > { %v1189_v7 = vadd.f32 %v1188_v5, %v1187_v2  ;;  %v1190_v8 = vpop.f32.mrb[6].mxu1  ;;  %v1151_v9 = vpop.f32.mrb[7].mxu0 }
 0x113   : > { %v1152_v11 = vadd.f32 %v1151_v9, %v1150_v6  ;;  %v1191_v12 = vpop.f32.mrb[7].mxu1  ;;  %738 = vadd.xlane.f32.xlu0 %v737_v10 }
 0x114   : > { %v1192_v13 = vadd.f32 %v1191_v12, %v1190_v8  ;;  %v1441_v14 = vadd.f32 %v1189_v7, %v1149_v4 }
 0x116   : > { %v740_v15 = vsel %vm733_vm0, %v1441_v14, 0.0  ;;  %v1445_v16 = vadd.f32 %v1192_v13, %v1152_v11 }
 0x117   : > { %741 = vadd.xlane.f32.xlu1 %v740_v15  ;;  %v1153_v17 = vpop.f32.mrb[8].mxu0 }
 0x118   : > { %v1193_v18 = vpop.f32.mrb[8].mxu1  ;;  %v1154_v19 = vpop.f32.mrb[9].mxu0  ;;  %v743_v26 = vsel %vm733_vm0, %v1445_v16, 0.0 }
 0x119   : > { %v1155_v20 = vadd.f32 %v1154_v19, %v1153_v17  ;;  %v1194_v21 = vpop.f32.mrb[9].mxu1  ;;  %v1156_v22 = vpop.f32.mrb[10].mxu0 }
 0x11a   : > { %v1195_v23 = vadd.f32 %v1194_v21, %v1193_v18  ;;  %v1196_v24 = vpop.f32.mrb[10].mxu1  ;;  %v1157_v25 = vpop.f32.mrb[11].mxu0 }
 0x11b   : > { %v1158_v27 = vadd.f32 %v1157_v25, %v1156_v22  ;;  %v1197_v28 = vpop.f32.mrb[11].mxu1  ;;  %744 = vadd.xlane.f32.xlu1 %v743_v26 }
 0x11c   : > { %v1198_v29 = vadd.f32 %v1197_v28, %v1196_v24  ;;  %v1449_v30 = vadd.f32 %v1195_v23, %v1155_v20 }
 0x11e   : > { %v746_v31 = vsel %vm733_vm0, %v1449_v30, 0.0  ;;  %v1453_v32 = vadd.f32 %v1198_v29, %v1158_v27 }
 0x11f   : > { %747 = vadd.xlane.f32.xlu0 %v746_v31  ;;  %v1159_v33 = vpop.f32.mrb[12].mxu0 }
 0x120   : > { %v1199_v34 = vpop.f32.mrb[12].mxu1  ;;  %v1160_v35 = vpop.f32.mrb[13].mxu0  ;;  %v749_v36 = vsel %vm733_vm0, %v1453_v32, 0.0 }
 0x121   : > { %v1161_v37 = vadd.f32 %v1160_v35, %v1159_v33  ;;  %v1200_v38 = vpop.f32.mrb[13].mxu1  ;;  %750 = vadd.xlane.f32.xlu1 %v749_v36  ;;  %v1162_v39 = vpop.f32.mrb[14].mxu0  ;;  %v902_v35 = vld [vmem:[%s1635_s3 + $0x38] sm:$0xff] }
 0x122   : > { %v1201_v40 = vadd.f32 %v1200_v38, %v1199_v34  ;;  %v1202_v41 = vpop.f32.mrb[14].mxu1  ;;  %v1163_v42 = vpop.f32.mrb[15].mxu0 }
 0x123   : > { %v1164_v43 = vadd.f32 %v1163_v42, %v1162_v39  ;;  %v1203_v44 = vpop.f32.mrb[15].mxu1 }
 0x124   : > { %v1457_v45 = vadd.f32 %v1201_v40, %v1161_v37  ;;  %v1204_v46 = vadd.f32 %v1203_v44, %v1202_v41 }
 0x126   : > { %v752_v47 = vsel %vm733_vm0, %v1457_v45, 0.0  ;;  %v1461_v48 = vadd.f32 %v1204_v46, %v1164_v43 }
 0x127   : > { %753 = vadd.xlane.f32.xlu0 %v752_v47 }
 0x128   : > { %v755_v61 = vsel %vm733_vm0, %v1461_v48, 0.0 }
 0x132   : > { %854 = vperm.xlu1 %1217, %v840_v49  }
 0x136   : > { %859 = vperm.xlu1 %1217, %v841_v50   ;;  %v901_v50 = vld [vmem:[%s1635_s3 + $0x30] sm:$0xff] }
 0x13a   : > { %905 = vperm.xlu1 %1217, %v895_v51  }
 0x13d   : > { %849 = vperm.xlu0 %1216, %v839_v52  }
 0x13e   : > { %910 = vperm.xlu1 %1217, %v896_v53  }
 0x141   : > { %874 = vperm.xlu0 %1216, %v844_v54  }
 0x142   : > { %864 = vperm.xlu1 %1217, %v842_v55  }
 0x145   : > { %879 = vperm.xlu0 %1216, %v845_v56  }
 0x146   : > { %915 = vperm.xlu1 %1217, %v897_v57  }
 0x149   : > { %884 = vperm.xlu0 %1216, %v846_v58  }
 0x14a   : > { %869 = vperm.xlu1 %1217, %v843_v59  }
 0x14e   : > { %920 = vperm.xlu1 %1217, %v898_v60  }
 0x172   : > { %756 = vadd.xlane.f32.xlu1 %v755_v61 }
 0x183   : > { %925 = vperm.xlu1 %1217, %v899_v63  }
 0x187   : > { %930 = vperm.xlu1 %1217, %v900_v1  }
 0x19c   : > { %v736_v2 = vpop.xlane.xlu0 %735 }
 0x19d   : > { %v759_v3 = vmul.f32 0.0625, %v736_v2 }
 0x19f   : > { %v1508_v4 = vsub.f32 %v1433_v62, %v759_v3 }
 0x1a0   : > { %v739_v5 = vpop.xlane.xlu0 %738 }
 0x1a1   : > { %v760_v6 = vmul.f32 0.0625, %v739_v5  ;;  %v775_v7 = vmul.f32 %v1508_v4, %v1508_v4 }
 0x1a3   : > { %v1513_v8 = vsub.f32 %v1437_v0, %v760_v6  ;;  %v783_v9 = vsel %vm733_vm0, %v775_v7, 0.0 }
 0x1a4   : > { %v742_v10 = vpop.xlane.xlu1 %741  ;;  %784 = vadd.xlane.f32.xlu0 %v783_v9 }
 0x1a5   : > { %v761_v11 = vmul.f32 0.0625, %v742_v10  ;;  %v776_v12 = vmul.f32 %v1513_v8, %v1513_v8 }
 0x1a7   : > { %v1519_v13 = vsub.f32 %v1441_v14, %v761_v11  ;;  %v786_v18 = vsel %vm733_vm0, %v776_v12, 0.0 }
 0x1a8   : > { %v745_v62 = vpop.xlane.xlu1 %744 }
 0x1a9   : > { %v762_v15 = vmul.f32 0.0625, %v745_v62  ;;  %v777_v17 = vmul.f32 %v1519_v13, %v1519_v13 }
 0x1ab   : > { %v1525_v0 = vsub.f32 %v1445_v16, %v762_v15  ;;  %787 = vadd.xlane.f32.xlu1 %v786_v18  ;;  %v789_v19 = vsel %vm733_vm0, %v777_v17, 0.0 }
 0x1ac   : > { %790 = vadd.xlane.f32.xlu0 %v789_v19  ;;  %v748_v20 = vpop.xlane.xlu0 %747 }
 0x1ad   : > { %v763_v21 = vmul.f32 0.0625, %v748_v20  ;;  %v778_v14 = vmul.f32 %v1525_v0, %v1525_v0 }
 0x1ae   : > { %v751_v22 = vpop.xlane.xlu1 %750 }
 0x1af   : > { %v1531_v23 = vsub.f32 %v1449_v30, %v763_v21  ;;  %v764_v24 = vmul.f32 0.0625, %v751_v22  ;;  %v792_v25 = vsel %vm733_vm0, %v778_v14, 0.0 }
 0x1b0   : > { %793 = vadd.xlane.f32.xlu1 %v792_v25 }
 0x1b1   : > { %v1535_v16 = vsub.f32 %v1453_v32, %v764_v24  ;;  %v779_v26 = vmul.f32 %v1531_v23, %v1531_v23 }
 0x1b2   : > { %v855_v36 = vpop.permute.xlu1 %854 }
 0x1b3   : > { %v795_v27 = vsel %vm733_vm0, %v779_v26, 0.0  ;;  %v780_v28 = vmul.f32 %v1535_v16, %v1535_v16 }
 0x1b4   : > { %796 = vadd.xlane.f32.xlu0 %v795_v27  ;;  %v754_v29 = vpop.xlane.xlu0 %753 }
 0x1b5   : > { %v765_v31 = vmul.f32 0.0625, %v754_v29  ;;  %v798_v30 = vsel %vm733_vm0, %v780_v28, 0.0 }
 0x1b6   : > { %799 = vadd.xlane.f32.xlu1 %v798_v30  ;;  %v860_v37 = vpop.permute.xlu1 %859 }
 0x1b7   : > { %v1544_v33 = vsub.f32 %v1457_v45, %v765_v31 }
 0x1b9   : > { %v781_v32 = vmul.f32 %v1544_v33, %v1544_v33 }
 0x1ba   : > { %v906_v38 = vpop.permute.xlu1 %905 }
 0x1bb   : > { %v801_v34 = vsel %vm733_vm0, %v781_v32, 0.0 }
 0x1bc   : > { %802 = vadd.xlane.f32.xlu0 %v801_v34  ;;  %v850_v51 = vpop.permute.xlu0 %849 }
 0x1be   : > { %v911_v39 = vpop.permute.xlu1 %910 }
 0x1c0   : > { %v1567_v52 = vpop.permute.xlu0 %874 }
 0x1c2   : > { %v1552_v40 = vpop.permute.xlu1 %864 }
 0x1c4   : > { %v1569_v53 = vpop.permute.xlu0 %879 }
 0x1c6   : > { %v916_v41 = vpop.permute.xlu1 %915 }
 0x1ca   : > { %v1554_v42 = vpop.permute.xlu1 %869 }
 0x1ce   : > { %v1556_v43 = vpop.permute.xlu1 %920 }
 0x1d2   : > { %940 = vperm.xlu0 %1216, %v902_v35  }
 0x1ff   : > { %v757_v44 = vpop.xlane.xlu1 %756 }
 0x200   : > { %v766_v45 = vmul.f32 0.0625, %v757_v44 }
 0x202   : > { %v1559_v46 = vsub.f32 %v1461_v48, %v766_v45  ;;  %v1573_v48 = vpop.permute.xlu0 %884 }
 0x203   : > { %v1571_v54 = vpop.permute.xlu1 %925 }
 0x204   : > { %v782_v47 = vmul.f32 %v1559_v46, %v1559_v46 }
 0x206   : > { %v804_v49 = vsel %vm733_vm0, %v782_v47, 0.0 }
 0x207   : > { %805 = vadd.xlane.f32.xlu1 %v804_v49  ;;  %v1575_v55 = vpop.permute.xlu1 %930 }
 0x218   : > { %935 = vperm.xlu1 %1217, %v901_v50  }
 0x231   : > { %v785_v56 = vpop.xlane.xlu0 %784 }
 0x232   : > { %v807_v60 = vmul.f32 0.0625, %v785_v56 }
 0x234   : > { %v815_v2 = vadd.f32 1e-05, %v807_v60 }
 0x238   : > { %v788_v57 = vpop.xlane.xlu1 %787 }
 0x239   : > { %v808_v58 = vmul.f32 0.0625, %v788_v57  ;;  %v791_v59 = vpop.xlane.xlu0 %790 }
 0x23a   : > { %v809_v63 = vmul.f32 0.0625, %v791_v59 }
 0x23b   : > { %v816_v61 = vadd.f32 1e-05, %v808_v58  ;;  %v977_v58 = vld [vmem:[%s1636_s4 + $0x10] sm:$0xff] }
 0x23c   : > { %v817_v5 = vadd.f32 1e-05, %v809_v63 }
 0x23d   : > { %v794_v1 = vpop.xlane.xlu1 %793  ;;  %1274 = vrsqrt.f32 %v816_v61 }
 0x23e   : > { %v810_v6 = vmul.f32 0.0625, %v794_v1  ;;  %1276 = vrsqrt.f32 %v815_v2 }
 0x23f   : > { %1278 = vrsqrt.f32 %v817_v5 }
 0x240   : > { %v818_v10 = vadd.f32 1e-05, %v810_v6 }
 0x241   : > { %v797_v3 = vpop.xlane.xlu0 %796 }
 0x242   : > { %v811_v7 = vmul.f32 0.0625, %v797_v3  ;;  %1280 = vrsqrt.f32 %v818_v10  ;;  %v978_v3 = vld [vmem:[%s1636_s4 + $0x18] sm:$0xff] }
 0x243   : > { %v800_v9 = vpop.xlane.xlu1 %799 }
 0x244   : > { %v819_v11 = vadd.f32 1e-05, %v811_v7  ;;  %v812_v12 = vmul.f32 0.0625, %v800_v9 }
 0x246   : > { %1282 = vrsqrt.f32 %v819_v11  ;;  %v820_v17 = vadd.f32 1e-05, %v812_v12 }
 0x247   : > { %v1275_v15 = vpop.eup %1274 }
 0x248   : > { %v1277_v19 = vpop.eup %1276  ;;  %v832_v20 = vmul.f32 %v1275_v15, %v1513_v8  ;;  %1284 = vrsqrt.f32 %v820_v17  ;;  %v980_v15 = vld [vmem:[%s1636_s4 + $0x28] sm:$0xff] }
 0x249   : > { %v803_v62 = vpop.xlane.xlu0 %802  ;;  %v1279_v21 = vpop.eup %1278  ;;  %v831_v22 = vmul.f32 %v1277_v19, %v1508_v4 }
 0x24a   : > { %v813_v18 = vmul.f32 0.0625, %v803_v62  ;;  %v888_v24 = vmul.f32 %v855_v36, %v832_v20  ;;  %v833_v25 = vmul.f32 %v1279_v21, %v1519_v13  ;;  %v981_v21 = vld [vmem:[%s1636_s4 + $0x30] sm:$0xff] }
 0x24b   : > { %v887_v27 = vmul.f32 %v850_v51, %v831_v22 }
 0x24c   : > { %v821_v14 = vadd.f32 1e-05, %v813_v18  ;;  %v1281_v26 = vpop.eup %1280  ;;  %v944_v29 = vadd.f32 %v911_v39, %v888_v24  ;;  %v889_v31 = vmul.f32 %v860_v37, %v833_v25 }
 0x24d   : > { %v834_v30 = vmul.f32 %v1281_v26, %v1525_v0  ;;  %v943_v32 = vadd.f32 %v906_v38, %v887_v27 }
 0x24e   : > { %1286 = vrsqrt.f32 %v821_v14  ;;  %v960_v35 = vmul.f32 0.2, %v944_v29  ;;  %v945_v44 = vadd.f32 %v916_v41, %v889_v31  ;;  %vm952_vm1 = vcmp.ge.f32.partialorder %v944_v29, 0.0 }
 0x24f   : > { %v890_v45 = vmul.f32 %v1552_v40, %v834_v30  ;;  %v959_v4 = vmul.f32 0.2, %v943_v32  ;;  %vm951_vm2 = vcmp.ge.f32.partialorder %v943_v32, 0.0 }
 0x250   : > { %v1283_v28 = vpop.eup %1282  ;;  %v961_v0 = vmul.f32 0.2, %v945_v44  ;;  %v968_v38 = vsel %vm952_vm1, %v944_v29, %v960_v35  ;;  %vm953_vm3 = vcmp.ge.f32.partialorder %v945_v44, 0.0 }
 0x251   : > { %v835_v34 = vmul.f32 %v1283_v28, %v1531_v23  ;;  %v946_v37 = vadd.f32 %v1556_v43, %v890_v45  ;;  %v976_v23 = vld [vmem:[%s1636_s4 + $0x8] sm:$0xff]  ;;  %v975_v43 = vld [vmem:[%s1636_s4] sm:$0xff]  ;;  %v941_v27 = vpop.permute.xlu0 %940 }
 0x252   : > { %v1285_v8 = vpop.eup %1284  ;;  %v984_v51 = vmul.f32 %v976_v23, %v968_v38  ;;  %v969_v57 = vsel %vm953_vm3, %v945_v44, %v961_v0  ;;  %v1016_v23 = vld [vmem:[#allocation2] sm:$0x1] }
 0x253   : > { %v891_v13 = vmul.f32 %v1554_v42, %v835_v34  ;;  %v836_v36 = vmul.f32 %v1285_v8, %v1535_v16  ;;  %v967_v16 = vsel %vm951_vm2, %v943_v32, %v959_v4  ;;  %v962_v56 = vmul.f32 0.2, %v946_v37 }
 0x254   : > { %vm954_vm4 = vcmp.ge.f32.partialorder %v946_v37, 0.0  ;;  %v985_v61 = vmul.f32 %v977_v58, %v969_v57  ;;  %v992_v63 = vsel %vm733_vm0, %v984_v51, 0.0 }
 0x255   : > { %v892_v40 = vmul.f32 %v1567_v52, %v836_v36  ;;  %v947_v42 = vadd.f32 %v1571_v54, %v891_v13  ;;  %v983_v52 = vmul.f32 %v975_v43, %v967_v16  ;;  %v970_v2 = vsel %vm954_vm4, %v946_v37, %v962_v56 }
 0x256   : > { %v986_v9 = vmul.f32 %v978_v3, %v970_v2  ;;  %v994_v10 = vsel %vm733_vm0, %v985_v61, 0.0 }
 0x257   : > { %v948_v54 = vadd.f32 %v1575_v55, %v892_v40  ;;  %v963_v60 = vmul.f32 0.2, %v947_v42  ;;  %vm955_vm5 = vcmp.ge.f32.partialorder %v947_v42, 0.0  ;;  %v991_v5 = vsel %vm733_vm0, %v983_v52, 0.0 }
 0x258   : > { %v1287_v47 = vpop.eup %1286  ;;  %v993_v55 = vadd.f32 %v992_v63, %v991_v5  ;;  %v996_v19 = vsel %vm733_vm0, %v986_v9, 0.0 }
 0x259   : > { %v837_v49 = vmul.f32 %v1287_v47, %v1544_v33  ;;  %v964_v6 = vmul.f32 0.2, %v948_v54  ;;  %v971_v7 = vsel %vm955_vm5, %v947_v42, %v963_v60  ;;  %vm956_vm6 = vcmp.ge.f32.partialorder %v948_v54, 0.0 }
 0x25a   : > { %v995_v17 = vadd.f32 %v994_v10, %v993_v55 }
 0x25b   : > { %v893_v33 = vmul.f32 %v1569_v53, %v837_v49  ;;  %v979_v53 = vld [vmem:[%s1636_s4 + $0x20] sm:$0xff]  ;;  %v972_v62 = vsel %vm956_vm6, %v948_v54, %v964_v6 }
 0x25c   : > { %v987_v12 = vmul.f32 %v979_v53, %v971_v7  ;;  %v988_v22 = vmul.f32 %v980_v15, %v972_v62  ;;  %v997_v26 = vadd.f32 %v996_v19, %v995_v17 }
 0x25e   : > { %v998_v24 = vsel %vm733_vm0, %v987_v12, 0.0  ;;  %v1000_v30 = vsel %vm733_vm0, %v988_v22, 0.0 }
 0x25f   : > { %v999_v31 = vadd.f32 %v998_v24, %v997_v26 }
 0x261   : > { %v1001_v35 = vadd.f32 %v1000_v30, %v999_v31 }
 0x294   : > { %v806_v39 = vpop.xlane.xlu1 %805 }
 0x295   : > { %v814_v41 = vmul.f32 0.0625, %v806_v39 }
 0x297   : > { %v822_v50 = vadd.f32 1e-05, %v814_v41 }
 0x298   : > { %v936_v59 = vpop.permute.xlu1 %935 }
 0x299   : > { %1288 = vrsqrt.f32 %v822_v50  ;;  %v949_v1 = vadd.f32 %v936_v59, %v893_v33 }
 0x29b   : > { %v965_v11 = vmul.f32 0.2, %v949_v1  ;;  %vm957_vm7 = vcmp.ge.f32.partialorder %v949_v1, 0.0 }
 0x29d   : > { %v973_v14 = vsel %vm957_vm7, %v949_v1, %v965_v11 }
 0x29e   : > { %v989_v28 = vmul.f32 %v981_v21, %v973_v14 }
 0x2a0   : > { %v1002_v34 = vsel %vm733_vm0, %v989_v28, 0.0 }
 0x2a3   : > { %v1289_v18 = vpop.eup %1288 }
 0x2a4   : > { %v838_v20 = vmul.f32 %v1289_v18, %v1559_v46  ;;  %v982_v46 = vld [vmem:[%s1636_s4 + $0x38] sm:$0xff] }
 0x2a6   : > { %v894_v25 = vmul.f32 %v1573_v48, %v838_v20  ;;  %v1003_v48 = vadd.f32 %v1002_v34, %v1001_v35 }
 0x2a8   : > { %v950_v29 = vadd.f32 %v941_v27, %v894_v25 }
 0x2aa   : > { %vm958_vm8 = vcmp.ge.f32.partialorder %v950_v29, 0.0  ;;  %v966_v32 = vmul.f32 0.2, %v950_v29 }
 0x2ac   : > { %v974_v8 = vsel %vm958_vm8, %v950_v29, %v966_v32 }
 0x2ad   : > { %v990_v44 = vmul.f32 %v982_v46, %v974_v8 }
 0x2af   : > { %v1004_v45 = vsel %vm733_vm0, %v990_v44, 0.0 }
 0x2b0   : > { %v1005_v4 = vadd.f32 %v1004_v45, %v1003_v48 }
 0x2b2   : > { %1006 = vadd.xlane.f32.xlu1 %v1005_v4 }
 0x33f   : > { %v1007_v13 = vpop.xlane.xlu1 %1006 }
 0x340   : > { %v1008_v36 = vrot.slane %v1007_v13, 4 }
 0x342   : > { %v1009_v47 = vadd.f32 %v1008_v36, %v1007_v13 }
 0x344   : > { %v1010_v37 = vrot.slane %v1009_v47, 2 }
 0x346   : > { %v1011_v39 = vadd.f32 %v1010_v37, %v1009_v47 }
 0x348   : > { %v1012_v0 = vrot.slane %v1011_v39, 1 }
 0x34a   : > { %v1013_v38 = vadd.f32 %v1012_v0, %v1011_v39 }
 0x34c   : > { %1205 = vpush %v1013_v38 }
 0x37d   : > { %s1206_s15 = spop %1205 }
 0x37e   : > { %v1015_v41 = vstv %s1206_s15 }
 0x37f   : > { %v1017_v40 = vadd.f32 %v1016_v23, %v1015_v41 }
 0x381   : > { %1019 = vst.msk [vmem:[%s249_s18] sm:$0x1] %vm1018_vm9, %v1017_v40 }
 0x382 PF: > { %s18_s23 = sadd.s32 1, %s1296_s23  }
 0x383   : > { %p15_p4 = scmp.ge.s32.totalorder %s18_s23, 4  }
 0x385   :  { %17 = sbr.rel (!%p15_p4) target bundleno = 3 (0x3), region = 74 }

</bundles_post_ra>
